<compile_context>
chip_gen: v7x
topology: tpu7x:2x2x1
jax: 0.10.0
libtpu: 0.0.40
codegen_flags: <defaults>
</compile_context>

<pallas_src>
import functools
import math

import jax
import jax.numpy as jnp
from jax.experimental import pallas as pl
from jax.experimental.pallas import tpu as pltpu

D_MODEL = 32
N_HEADS = 4
D_K = D_MODEL // N_HEADS
D_FF = 64
LN_EPS = 1e-5            # torch.nn.LayerNorm default
NEG_INF = -1e9           # matches masked_fill(mask == 0, -1e9)


# ------------------------------ fused kernel --------------------------------

def _make_decoder_kernel(bb, t_q, t_s, has_tgt_mask, has_src_mask):
    """Builds the fused decoder-layer kernel for one (bb, t_q, D) block."""
    f32 = jnp.float32
    scale = 1.0 / math.sqrt(D_K)

    def kernel(*refs):
        (*ins, o_ref) = refs
        it = iter(ins)
        x_ref = next(it)                       # (bb, t_q, D)
        mem_ref = next(it)                     # (bb, t_s, D)
        tmask_ref = next(it) if has_tgt_mask else None
        smask_ref = next(it) if has_src_mask else None
        ln_ref = next(it)                      # (6, D)
        wqkv_ref = next(it)                    # (3, H, D, Dk)  per-head Wq/Wk/Wv
        bqkv_ref = next(it)                    # (3, H, 1, Dk)
        wo_ref = next(it)                      # (H, Dk, D)
        w1_ref = next(it)                      # (D, D_FF)
        w2_ref = next(it)                      # (D_FF, D)
        bvec_ref = next(it)                    # (3, D_FF): rows = bo | b1 | b2

        # Activations stay 2-D (rows = batch*time, lanes = features); only the
        # attention einsums use a (bb, T, Dk) view, via leading-dim reshapes
        # only (no relayout).
        x2 = x_ref[...].reshape(bb * t_q, D_MODEL).astype(f32)
        m2 = mem_ref[...].reshape(bb * t_s, D_MODEL).astype(f32)

        ln_w = ln_ref[...]

        def layer_norm(v, i):
            g = ln_w[2 * i:2 * i + 1, :]
            b = ln_w[2 * i + 1:2 * i + 2, :]
            mu = jnp.mean(v, axis=-1, keepdims=True)
            c = v - mu
            var = jnp.mean(c * c, axis=-1, keepdims=True)   # biased, as torch
            return c * jax.lax.rsqrt(var + LN_EPS) * g + b

        bo = bvec_ref[0:1, :D_MODEL]           # (1, D)
        b1 = bvec_ref[1:2, :]                  # (1, D_FF)
        b2 = bvec_ref[2:3, :D_MODEL]           # (1, D)

        # Per-head weights, loaded once and reused by both attention calls
        # (the reference forward reuses self_attn weights for the cross step).
        wq = [wqkv_ref[0, h] for h in range(N_HEADS)]
        wk = [wqkv_ref[1, h] for h in range(N_HEADS)]
        wv = [wqkv_ref[2, h] for h in range(N_HEADS)]
        bq = [bqkv_ref[0, h] for h in range(N_HEADS)]
        bk = [bqkv_ref[1, h] for h in range(N_HEADS)]
        bv = [bqkv_ref[2, h] for h in range(N_HEADS)]
        wo = [wo_ref[h] for h in range(N_HEADS)]

        # Target mask: generated in-kernel (causal) unless caller supplied one.
        if has_tgt_mask:
            tgt_add = tmask_ref[...].astype(f32)
        else:
            rows = jax.lax.broadcasted_iota(jnp.int32, (t_q, t_q), 0)
            cols = jax.lax.broadcasted_iota(jnp.int32, (t_q, t_q), 1)
            tgt_add = jnp.where(rows >= cols, 0.0, NEG_INF).astype(f32)[None]
        src_add = smask_ref[...].astype(f32) if has_src_mask else None

        def mha(q_in, kv_in, n_kv, mask_add):
            # q_in: (bb*t_q, D), kv_in: (bb*n_kv, D).  Heads unrolled with
            # pre-split per-head weights: no activation slicing, no concat,
            # no transpose.
            out = None
            for h in range(N_HEADS):
                q = jnp.dot(q_in, wq[h], preferred_element_type=f32) + bq[h]
                k = jnp.dot(kv_in, wk[h], preferred_element_type=f32) + bk[h]
                v = jnp.dot(kv_in, wv[h], preferred_element_type=f32) + bv[h]
                qh = q.reshape(bb, t_q, D_K)
                kh = k.reshape(bb, n_kv, D_K)
                vh = v.reshape(bb, n_kv, D_K)
                s = jnp.einsum("bqd,bkd->bqk", qh, kh,
                               preferred_element_type=f32) * scale
                if mask_add is not None:
                    s = s + mask_add
                s = s - jnp.max(s, axis=-1, keepdims=True)
                p = jnp.exp(s)
                p = p / jnp.sum(p, axis=-1, keepdims=True)   # exact division
                z = jnp.einsum("bqk,bkd->bqd", p, vh,
                               preferred_element_type=f32)
                c = jnp.dot(z.reshape(bb * t_q, D_K), wo[h],
                            preferred_element_type=f32)
                out = c if out is None else out + c
            return out + bo                                   # (bb*t_q, D)

        # --- sublayer 0: masked self-attention + residual -------------------
        y = layer_norm(x2, 0)
        x2 = x2 + mha(y, y, t_q, tgt_add)

        # --- sublayer 1: cross-attention + residual --------------------------
        # (reference forward reuses self_attn weights here; reproduced exactly)
        y = layer_norm(x2, 1)
        x2 = x2 + mha(y, m2, t_s, src_add)

        # --- sublayer 2: position-wise FFN + residual -------------------------
        y = layer_norm(x2, 2)
        hdn = jnp.maximum(
            jnp.dot(y, w1_ref[...], preferred_element_type=f32) + b1, 0.0)
        x2 = x2 + jnp.dot(hdn, w2_ref[...], preferred_element_type=f32) + b2

        # Single-shot output store.
        o_ref[...] = x2.reshape(bb, t_q, D_MODEL).astype(o_ref.dtype)

    return kernel


# -------------------------------- wrapper ------------------------------------

def _full_block(shape):
    nd = len(shape)
    return pl.BlockSpec(shape, lambda b, _nd=nd: (0,) * _nd)


@functools.partial(jax.jit, static_argnames=("batch_blocks",))
def decoder_layer_forward(fused_params, x, memory, src_mask=None, tgt_mask=None,
                          *, batch_blocks=1):
    """Fused DecoderLayer forward.

    tgt_mask=None -> causal mask generated in-kernel (no (B,T,T) operand).
    src_mask=None -> no source masking (operand skipped entirely).
    batch_blocks  -> grid steps the batch is split into.  1 folds the whole
                     batch into one block (best on single-TC v5e/v6e);
                     2 keeps both v7x TensorCores busy when B is even.
    """
    B, t_q, d = x.shape
    t_s = memory.shape[1]
    assert d == D_MODEL and B % batch_blocks == 0
    bb = B // batch_blocks
    fp = fused_params

    inputs = [x, memory]
    in_specs = [pl.BlockSpec((bb, t_q, d), lambda b: (b, 0, 0)),
                pl.BlockSpec((bb, t_s, d), lambda b: (b, 0, 0))]

    has_tgt = tgt_mask is not None
    has_src = src_mask is not None
    if has_tgt:                                # additive: 0 keep / -1e9 drop
        add_tgt = jnp.where(tgt_mask != 0, 0.0, NEG_INF).astype(jnp.float32)
        inputs.append(add_tgt)
        in_specs.append(pl.BlockSpec((bb,) + add_tgt.shape[1:],
                                     lambda b: (b, 0, 0)))
    if has_src:
        add_src = jnp.where(src_mask != 0, 0.0, NEG_INF).astype(jnp.float32)
        inputs.append(add_src)
        in_specs.append(pl.BlockSpec((bb,) + add_src.shape[1:],
                                     lambda b: (b, 0, 0)))

    params = [fp["ln"], fp["wqkv"], fp["bqkv"], fp["wo"],
              fp["w1"], fp["w2"], fp["bvec"]]
    inputs.extend(params)
    in_specs.extend(_full_block(p.shape) for p in params)

    kernel = _make_decoder_kernel(bb, t_q, t_s, has_tgt, has_src)

    return pl.pallas_call(
        kernel,
        out_shape=jax.ShapeDtypeStruct((B, t_q, d), x.dtype),
        grid=(batch_blocks,),
        in_specs=in_specs,
        out_specs=pl.BlockSpec((bb, t_q, d), lambda b: (b, 0, 0)),
        compiler_params=pltpu.CompilerParams(
            dimension_semantics=("parallel",)),
    )(*inputs)


# ----------------------------- parameter init --------------------------------

def _init_linear(k, dout, din):
    kw, kb = jax.random.split(k)
    bound = 1.0 / math.sqrt(din)
    w = jax.random.uniform(kw, (dout, din), jnp.float32, -bound, bound)
    b = jax.random.uniform(kb, (dout,), jnp.float32, -bound, bound)
    return w, b


def _init_mha(key):
    ks = jax.random.split(key, 4)
    p = {}
    for name, k in zip(("q", "k", "v", "o"), ks):
        w, b = _init_linear(k, D_MODEL, D_MODEL)
        p["w" + name], p["b" + name] = w, b
    return p


def init_params(key):
    k_self, k_src, k_ff1, k_ff2 = jax.random.split(key, 4)
    w1, b1 = _init_linear(k_ff1, D_FF, D_MODEL)
    w2, b2 = _init_linear(k_ff2, D_MODEL, D_FF)
    params = {
        "self_attn": _init_mha(k_self),
        # src_attn exists in __init__ but is unused by the reference forward.
        "src_attn": _init_mha(k_src),
        "ff": {"w1": w1, "b1": b1, "w2": w2, "b2": b2},
    }
    for i in range(3):
        params[f"ln{i}_g"] = jnp.ones((D_MODEL,), jnp.float32)
        params[f"ln{i}_b"] = jnp.zeros((D_MODEL,), jnp.float32)
    return params


def prepare_fused_params(params):
    """Pre-transpose / pre-split weights ONCE (wrapper-side layout plumbing)."""
    sa = params["self_attn"]
    ff = params["ff"]

    def per_head_w(w):          # torch (out, in) -> (H, D_in, Dk)
        return w.T.reshape(D_MODEL, N_HEADS, D_K).transpose(1, 0, 2)

    def per_head_b(b):          # (D,) -> (H, 1, Dk)
        return b.reshape(N_HEADS, 1, D_K)

    wqkv = jnp.stack([per_head_w(sa["wq"]),
                      per_head_w(sa["wk"]),
                      per_head_w(sa["wv"])])              # (3, H, D, Dk)
    bqkv = jnp.stack([per_head_b(sa["bq"]),
                      per_head_b(sa["bk"]),
                      per_head_b(sa["bv"])])              # (3, H, 1, Dk)
    wo = sa["wo"].T.reshape(N_HEADS, D_K, D_MODEL)        # (H, Dk, D)

    ln = jnp.stack([params["ln0_g"], params["ln0_b"],
                    params["ln1_g"], params["ln1_b"],
                    params["ln2_g"], params["ln2_b"]])    # (6, D)

    bvec = jnp.zeros((3, D_FF), jnp.float32)              # bo | b1 | b2 slab
    bvec = bvec.at[0, :D_MODEL].set(sa["bo"])
    bvec = bvec.at[1, :].set(ff["b1"])
    bvec = bvec.at[2, :D_MODEL].set(ff["b2"])

    return {"ln": ln, "wqkv": wqkv, "bqkv": bqkv, "wo": wo,
            "w1": ff["w1"].T, "w2": ff["w2"].T, "bvec": bvec}


# ---------------------------- pure-JAX reference ------------------------------

def reference_forward(params, x, memory, src_mask, tgt_mask):
    sa = params["self_attn"]
    ff = params["ff"]

    def ln(v, g, b):
        mu = v.mean(-1, keepdims=True)
        c = v - mu
        var = (c * c).mean(-1, keepdims=True)
        return c * jax.lax.rsqrt(var + LN_EPS) * g + b

    def mha(q_in, kv_in, mask):
        B, tq, _ = q_in.shape
        tk = kv_in.shape[1]

        def split(t, T):
            return t.reshape(B, T, N_HEADS, D_K).transpose(0, 2, 1, 3)

        qh = split(q_in @ sa["wq"].T + sa["bq"], tq)
        kh = split(kv_in @ sa["wk"].T + sa["bk"], tk)
        vh = split(kv_in @ sa["wv"].T + sa["bv"], tk)
        s = jnp.einsum("bhqd,bhkd->bhqk", qh, kh) / math.sqrt(D_K)
        s = jnp.where(mask[:, None] != 0, s, NEG_INF)
        p = jax.nn.softmax(s, axis=-1)
        z = jnp.einsum("bhqk,bhkd->bhqd", p, vh)
        z = z.transpose(0, 2, 1, 3).reshape(B, tq, D_MODEL)
        return z @ sa["wo"].T + sa["bo"]

    y = ln(x, params["ln0_g"], params["ln0_b"])
    x = x + mha(y, y, tgt_mask)
    y = ln(x, params["ln1_g"], params["ln1_b"])
    x = x + mha(y, memory, src_mask)          # reference reuses self_attn here
    y = ln(x, params["ln2_g"], params["ln2_b"])
    h = jax.nn.relu(y @ ff["w1"].T + ff["b1"])
    return x + h @ ff["w2"].T + ff["b2"]


# ---------------------------------- main --------------------------------------

if __name__ == "__main__":
    B, T_TGT, T_SRC = 2, 8, 8
    key = jax.random.PRNGKey(0)
    kp, kx, km = jax.random.split(key, 3)
    params = init_params(kp)
    fused = prepare_fused_params(params)

    x = jax.random.normal(kx, (B, T_TGT, D_MODEL), jnp.float32)
    memory = jax.random.normal(km, (B, T_SRC, D_MODEL), jnp.float32)
    tgt_mask = jnp.broadcast_to(
        jnp.tril(jnp.ones((T_TGT, T_TGT), jnp.float32)), (B, T_TGT, T_TGT))
    src_mask = jnp.ones((B, 1, T_SRC), jnp.float32)   # key-padding, all keep

    # Fast path: causal mask generated in-kernel, all-ones src mask skipped.
    out = decoder_layer_forward(fused, x, memory)
    jax.block_until_ready(out)

    # General path: explicit mask operands (same math for these masks).
    out_masked = decoder_layer_forward(fused, x, memory, src_mask, tgt_mask)

    ref = reference_forward(params, x, memory, src_mask, tgt_mask)

    assert out.shape == (B, T_TGT, D_MODEL) and out.dtype == jnp.float32
    assert jnp.allclose(out, out_masked, atol=1e-5, rtol=1e-5)
    assert jnp.allclose(out, ref, atol=1e-4, rtol=1e-4)
    print("KERNEL_OK")
</pallas_src>

<mosaic_0001>
module attributes {stable_mosaic.version = 11 : i64} {
  func.func @kernel(%arg0: i32, %arg1: memref<2x8x32xf32, #tpu.memory_space<vmem>>, %arg2: memref<2x8x32xf32, #tpu.memory_space<vmem>>, %arg3: memref<6x32xf32, #tpu.memory_space<vmem>>, %arg4: memref<3x4x32x8xf32, #tpu.memory_space<vmem>>, %arg5: memref<3x4x1x8xf32, #tpu.memory_space<vmem>>, %arg6: memref<4x8x32xf32, #tpu.memory_space<vmem>>, %arg7: memref<32x64xf32, #tpu.memory_space<vmem>>, %arg8: memref<64x32xf32, #tpu.memory_space<vmem>>, %arg9: memref<3x64xf32, #tpu.memory_space<vmem>>, %arg10: memref<2x8x32xf32, #tpu.memory_space<vmem>>) attributes {dimension_semantics = [#tpu.dimension_semantics<parallel>], iteration_bounds = array<i64: 1>, scalar_prefetch = 0 : i64, scratch_operands = 0 : i64, tpu.core_type = #tpu.core_type<tc>, window_params = [{transform_indices = @transform_0, window_bounds = array<i64: 2, 8, 32>}, {transform_indices = @transform_1, window_bounds = array<i64: 2, 8, 32>}, {pipeline_mode = #tpu.pipeline_mode<synchronous>, transform_indices = @transform_2, window_bounds = array<i64: 6, 32>}, {pipeline_mode = #tpu.pipeline_mode<synchronous>, transform_indices = @transform_3, window_bounds = array<i64: 3, 4, 32, 8>}, {pipeline_mode = #tpu.pipeline_mode<synchronous>, transform_indices = @transform_4, window_bounds = array<i64: 3, 4, 1, 8>}, {pipeline_mode = #tpu.pipeline_mode<synchronous>, transform_indices = @transform_5, window_bounds = array<i64: 4, 8, 32>}, {pipeline_mode = #tpu.pipeline_mode<synchronous>, transform_indices = @transform_6, window_bounds = array<i64: 32, 64>}, {pipeline_mode = #tpu.pipeline_mode<synchronous>, transform_indices = @transform_7, window_bounds = array<i64: 64, 32>}, {pipeline_mode = #tpu.pipeline_mode<synchronous>, transform_indices = @transform_8, window_bounds = array<i64: 3, 64>}, {transform_indices = @transform_9, window_bounds = array<i64: 2, 8, 32>}]} {
    %c0 = arith.constant 0 : index
    %c0_0 = arith.constant 0 : index
    %c0_1 = arith.constant 0 : index
    %0 = vector.load %arg1[%c0, %c0_0, %c0_1] : memref<2x8x32xf32, #tpu.memory_space<vmem>>, vector<2x8x32xf32>
    %1 = vector.shape_cast %0 : vector<2x8x32xf32> to vector<16x32xf32>
    %c0_2 = arith.constant 0 : index
    %c0_3 = arith.constant 0 : index
    %c0_4 = arith.constant 0 : index
    %2 = vector.load %arg2[%c0_2, %c0_3, %c0_4] : memref<2x8x32xf32, #tpu.memory_space<vmem>>, vector<2x8x32xf32>
    %3 = vector.shape_cast %2 : vector<2x8x32xf32> to vector<16x32xf32>
    %c0_5 = arith.constant 0 : index
    %c0_6 = arith.constant 0 : index
    %4 = vector.load %arg3[%c0_5, %c0_6] : memref<6x32xf32, #tpu.memory_space<vmem>>, vector<6x32xf32>
    %c0_7 = arith.constant 0 : index
    %c0_8 = arith.constant 0 : index
    %5 = vector.load %arg9[%c0_7, %c0_8] : memref<3x64xf32, #tpu.memory_space<vmem>>, vector<1x32xf32>
    %c1 = arith.constant 1 : index
    %c0_9 = arith.constant 0 : index
    %6 = vector.load %arg9[%c1, %c0_9] : memref<3x64xf32, #tpu.memory_space<vmem>>, vector<1x64xf32>
    %c2 = arith.constant 2 : index
    %c0_10 = arith.constant 0 : index
    %7 = vector.load %arg9[%c2, %c0_10] : memref<3x64xf32, #tpu.memory_space<vmem>>, vector<1x32xf32>
    %c0_11 = arith.constant 0 : index
    %c0_12 = arith.constant 0 : index
    %c0_13 = arith.constant 0 : index
    %c0_14 = arith.constant 0 : index
    %8 = vector.load %arg4[%c0_11, %c0_12, %c0_13, %c0_14] : memref<3x4x32x8xf32, #tpu.memory_space<vmem>>, vector<1x1x32x8xf32>
    %9 = vector.shape_cast %8 : vector<1x1x32x8xf32> to vector<32x8xf32>
    %c0_15 = arith.constant 0 : index
    %c1_16 = arith.constant 1 : index
    %c0_17 = arith.constant 0 : index
    %c0_18 = arith.constant 0 : index
    %10 = vector.load %arg4[%c0_15, %c1_16, %c0_17, %c0_18] : memref<3x4x32x8xf32, #tpu.memory_space<vmem>>, vector<1x1x32x8xf32>
    %11 = vector.shape_cast %10 : vector<1x1x32x8xf32> to vector<32x8xf32>
    %c0_19 = arith.constant 0 : index
    %c2_20 = arith.constant 2 : index
    %c0_21 = arith.constant 0 : index
    %c0_22 = arith.constant 0 : index
    %12 = vector.load %arg4[%c0_19, %c2_20, %c0_21, %c0_22] : memref<3x4x32x8xf32, #tpu.memory_space<vmem>>, vector<1x1x32x8xf32>
    %13 = vector.shape_cast %12 : vector<1x1x32x8xf32> to vector<32x8xf32>
    %c0_23 = arith.constant 0 : index
    %c3 = arith.constant 3 : index
    %c0_24 = arith.constant 0 : index
    %c0_25 = arith.constant 0 : index
    %14 = vector.load %arg4[%c0_23, %c3, %c0_24, %c0_25] : memref<3x4x32x8xf32, #tpu.memory_space<vmem>>, vector<1x1x32x8xf32>
    %15 = vector.shape_cast %14 : vector<1x1x32x8xf32> to vector<32x8xf32>
    %c1_26 = arith.constant 1 : index
    %c0_27 = arith.constant 0 : index
    %c0_28 = arith.constant 0 : index
    %c0_29 = arith.constant 0 : index
    %16 = vector.load %arg4[%c1_26, %c0_27, %c0_28, %c0_29] : memref<3x4x32x8xf32, #tpu.memory_space<vmem>>, vector<1x1x32x8xf32>
    %17 = vector.shape_cast %16 : vector<1x1x32x8xf32> to vector<32x8xf32>
    %c1_30 = arith.constant 1 : index
    %c1_31 = arith.constant 1 : index
    %c0_32 = arith.constant 0 : index
    %c0_33 = arith.constant 0 : index
    %18 = vector.load %arg4[%c1_30, %c1_31, %c0_32, %c0_33] : memref<3x4x32x8xf32, #tpu.memory_space<vmem>>, vector<1x1x32x8xf32>
    %19 = vector.shape_cast %18 : vector<1x1x32x8xf32> to vector<32x8xf32>
    %c1_34 = arith.constant 1 : index
    %c2_35 = arith.constant 2 : index
    %c0_36 = arith.constant 0 : index
    %c0_37 = arith.constant 0 : index
    %20 = vector.load %arg4[%c1_34, %c2_35, %c0_36, %c0_37] : memref<3x4x32x8xf32, #tpu.memory_space<vmem>>, vector<1x1x32x8xf32>
    %21 = vector.shape_cast %20 : vector<1x1x32x8xf32> to vector<32x8xf32>
    %c1_38 = arith.constant 1 : index
    %c3_39 = arith.constant 3 : index
    %c0_40 = arith.constant 0 : index
    %c0_41 = arith.constant 0 : index
    %22 = vector.load %arg4[%c1_38, %c3_39, %c0_40, %c0_41] : memref<3x4x32x8xf32, #tpu.memory_space<vmem>>, vector<1x1x32x8xf32>
    %23 = vector.shape_cast %22 : vector<1x1x32x8xf32> to vector<32x8xf32>
    %c2_42 = arith.constant 2 : index
    %c0_43 = arith.constant 0 : index
    %c0_44 = arith.constant 0 : index
    %c0_45 = arith.constant 0 : index
    %24 = vector.load %arg4[%c2_42, %c0_43, %c0_44, %c0_45] : memref<3x4x32x8xf32, #tpu.memory_space<vmem>>, vector<1x1x32x8xf32>
    %25 = vector.shape_cast %24 : vector<1x1x32x8xf32> to vector<32x8xf32>
    %c2_46 = arith.constant 2 : index
    %c1_47 = arith.constant 1 : index
    %c0_48 = arith.constant 0 : index
    %c0_49 = arith.constant 0 : index
    %26 = vector.load %arg4[%c2_46, %c1_47, %c0_48, %c0_49] : memref<3x4x32x8xf32, #tpu.memory_space<vmem>>, vector<1x1x32x8xf32>
    %27 = vector.shape_cast %26 : vector<1x1x32x8xf32> to vector<32x8xf32>
    %c2_50 = arith.constant 2 : index
    %c2_51 = arith.constant 2 : index
    %c0_52 = arith.constant 0 : index
    %c0_53 = arith.constant 0 : index
    %28 = vector.load %arg4[%c2_50, %c2_51, %c0_52, %c0_53] : memref<3x4x32x8xf32, #tpu.memory_space<vmem>>, vector<1x1x32x8xf32>
    %29 = vector.shape_cast %28 : vector<1x1x32x8xf32> to vector<32x8xf32>
    %c2_54 = arith.constant 2 : index
    %c3_55 = arith.constant 3 : index
    %c0_56 = arith.constant 0 : index
    %c0_57 = arith.constant 0 : index
    %30 = vector.load %arg4[%c2_54, %c3_55, %c0_56, %c0_57] : memref<3x4x32x8xf32, #tpu.memory_space<vmem>>, vector<1x1x32x8xf32>
    %31 = vector.shape_cast %30 : vector<1x1x32x8xf32> to vector<32x8xf32>
    %c0_58 = arith.constant 0 : index
    %c0_59 = arith.constant 0 : index
    %c0_60 = arith.constant 0 : index
    %c0_61 = arith.constant 0 : index
    %32 = vector.load %arg5[%c0_58, %c0_59, %c0_60, %c0_61] : memref<3x4x1x8xf32, #tpu.memory_space<vmem>>, vector<1x1x1x8xf32>
    %33 = vector.shape_cast %32 : vector<1x1x1x8xf32> to vector<1x8xf32>
    %c0_62 = arith.constant 0 : index
    %c1_63 = arith.constant 1 : index
    %c0_64 = arith.constant 0 : index
    %c0_65 = arith.constant 0 : index
    %34 = vector.load %arg5[%c0_62, %c1_63, %c0_64, %c0_65] : memref<3x4x1x8xf32, #tpu.memory_space<vmem>>, vector<1x1x1x8xf32>
    %35 = vector.shape_cast %34 : vector<1x1x1x8xf32> to vector<1x8xf32>
    %c0_66 = arith.constant 0 : index
    %c2_67 = arith.constant 2 : index
    %c0_68 = arith.constant 0 : index
    %c0_69 = arith.constant 0 : index
    %36 = vector.load %arg5[%c0_66, %c2_67, %c0_68, %c0_69] : memref<3x4x1x8xf32, #tpu.memory_space<vmem>>, vector<1x1x1x8xf32>
    %37 = vector.shape_cast %36 : vector<1x1x1x8xf32> to vector<1x8xf32>
    %c0_70 = arith.constant 0 : index
    %c3_71 = arith.constant 3 : index
    %c0_72 = arith.constant 0 : index
    %c0_73 = arith.constant 0 : index
    %38 = vector.load %arg5[%c0_70, %c3_71, %c0_72, %c0_73] : memref<3x4x1x8xf32, #tpu.memory_space<vmem>>, vector<1x1x1x8xf32>
    %39 = vector.shape_cast %38 : vector<1x1x1x8xf32> to vector<1x8xf32>
    %c1_74 = arith.constant 1 : index
    %c0_75 = arith.constant 0 : index
    %c0_76 = arith.constant 0 : index
    %c0_77 = arith.constant 0 : index
    %40 = vector.load %arg5[%c1_74, %c0_75, %c0_76, %c0_77] : memref<3x4x1x8xf32, #tpu.memory_space<vmem>>, vector<1x1x1x8xf32>
    %41 = vector.shape_cast %40 : vector<1x1x1x8xf32> to vector<1x8xf32>
    %c1_78 = arith.constant 1 : index
    %c1_79 = arith.constant 1 : index
    %c0_80 = arith.constant 0 : index
    %c0_81 = arith.constant 0 : index
    %42 = vector.load %arg5[%c1_78, %c1_79, %c0_80, %c0_81] : memref<3x4x1x8xf32, #tpu.memory_space<vmem>>, vector<1x1x1x8xf32>
    %43 = vector.shape_cast %42 : vector<1x1x1x8xf32> to vector<1x8xf32>
    %c1_82 = arith.constant 1 : index
    %c2_83 = arith.constant 2 : index
    %c0_84 = arith.constant 0 : index
    %c0_85 = arith.constant 0 : index
    %44 = vector.load %arg5[%c1_82, %c2_83, %c0_84, %c0_85] : memref<3x4x1x8xf32, #tpu.memory_space<vmem>>, vector<1x1x1x8xf32>
    %45 = vector.shape_cast %44 : vector<1x1x1x8xf32> to vector<1x8xf32>
    %c1_86 = arith.constant 1 : index
    %c3_87 = arith.constant 3 : index
    %c0_88 = arith.constant 0 : index
    %c0_89 = arith.constant 0 : index
    %46 = vector.load %arg5[%c1_86, %c3_87, %c0_88, %c0_89] : memref<3x4x1x8xf32, #tpu.memory_space<vmem>>, vector<1x1x1x8xf32>
    %47 = vector.shape_cast %46 : vector<1x1x1x8xf32> to vector<1x8xf32>
    %c2_90 = arith.constant 2 : index
    %c0_91 = arith.constant 0 : index
    %c0_92 = arith.constant 0 : index
    %c0_93 = arith.constant 0 : index
    %48 = vector.load %arg5[%c2_90, %c0_91, %c0_92, %c0_93] : memref<3x4x1x8xf32, #tpu.memory_space<vmem>>, vector<1x1x1x8xf32>
    %49 = vector.shape_cast %48 : vector<1x1x1x8xf32> to vector<1x8xf32>
    %c2_94 = arith.constant 2 : index
    %c1_95 = arith.constant 1 : index
    %c0_96 = arith.constant 0 : index
    %c0_97 = arith.constant 0 : index
    %50 = vector.load %arg5[%c2_94, %c1_95, %c0_96, %c0_97] : memref<3x4x1x8xf32, #tpu.memory_space<vmem>>, vector<1x1x1x8xf32>
    %51 = vector.shape_cast %50 : vector<1x1x1x8xf32> to vector<1x8xf32>
    %c2_98 = arith.constant 2 : index
    %c2_99 = arith.constant 2 : index
    %c0_100 = arith.constant 0 : index
    %c0_101 = arith.constant 0 : index
    %52 = vector.load %arg5[%c2_98, %c2_99, %c0_100, %c0_101] : memref<3x4x1x8xf32, #tpu.memory_space<vmem>>, vector<1x1x1x8xf32>
    %53 = vector.shape_cast %52 : vector<1x1x1x8xf32> to vector<1x8xf32>
    %c2_102 = arith.constant 2 : index
    %c3_103 = arith.constant 3 : index
    %c0_104 = arith.constant 0 : index
    %c0_105 = arith.constant 0 : index
    %54 = vector.load %arg5[%c2_102, %c3_103, %c0_104, %c0_105] : memref<3x4x1x8xf32, #tpu.memory_space<vmem>>, vector<1x1x1x8xf32>
    %55 = vector.shape_cast %54 : vector<1x1x1x8xf32> to vector<1x8xf32>
    %c0_106 = arith.constant 0 : index
    %c0_107 = arith.constant 0 : index
    %c0_108 = arith.constant 0 : index
    %56 = vector.load %arg6[%c0_106, %c0_107, %c0_108] : memref<4x8x32xf32, #tpu.memory_space<vmem>>, vector<1x8x32xf32>
    %57 = vector.shape_cast %56 : vector<1x8x32xf32> to vector<8x32xf32>
    %c1_109 = arith.constant 1 : index
    %c0_110 = arith.constant 0 : index
    %c0_111 = arith.constant 0 : index
    %58 = vector.load %arg6[%c1_109, %c0_110, %c0_111] : memref<4x8x32xf32, #tpu.memory_space<vmem>>, vector<1x8x32xf32>
    %59 = vector.shape_cast %58 : vector<1x8x32xf32> to vector<8x32xf32>
    %c2_112 = arith.constant 2 : index
    %c0_113 = arith.constant 0 : index
    %c0_114 = arith.constant 0 : index
    %60 = vector.load %arg6[%c2_112, %c0_113, %c0_114] : memref<4x8x32xf32, #tpu.memory_space<vmem>>, vector<1x8x32xf32>
    %61 = vector.shape_cast %60 : vector<1x8x32xf32> to vector<8x32xf32>
    %c3_115 = arith.constant 3 : index
    %c0_116 = arith.constant 0 : index
    %c0_117 = arith.constant 0 : index
    %62 = vector.load %arg6[%c3_115, %c0_116, %c0_117] : memref<4x8x32xf32, #tpu.memory_space<vmem>>, vector<1x8x32xf32>
    %63 = vector.shape_cast %62 : vector<1x8x32xf32> to vector<8x32xf32>
    %64 = tpu.iota {dimensions = array<i32: 0>} : vector<8x8xi32>
    %65 = tpu.iota {dimensions = array<i32: 1>} : vector<8x8xi32>
    %66 = arith.cmpi sge, %64, %65 : vector<8x8xi32>
    %cst = arith.constant 0.000000e+00 : f32
    %cst_118 = arith.constant -1.000000e+09 : f32
    %67 = vector.broadcast %cst : f32 to vector<8x8xf32>
    %68 = vector.broadcast %cst_118 : f32 to vector<8x8xf32>
    %69 = arith.select %66, %67, %68 : vector<8x8xi1>, vector<8x8xf32>
    %70 = vector.shape_cast %69 : vector<8x8xf32> to vector<1x8x8xf32>
    %71 = vector.extract_strided_slice %4 {offsets = [0, 0], sizes = [1, 32], strides = [1, 1]} : vector<6x32xf32> to vector<1x32xf32>
    %72 = vector.extract_strided_slice %4 {offsets = [1, 0], sizes = [1, 32], strides = [1, 1]} : vector<6x32xf32> to vector<1x32xf32>
    %cst_119 = arith.constant dense<0.000000e+00> : vector<16xf32>
    %73 = vector.multi_reduction <add>, %1, %cst_119 [1] : vector<16x32xf32> to vector<16xf32>
    %74 = vector.shape_cast %73 : vector<16xf32> to vector<16x1xf32>
    %cst_120 = arith.constant 3.200000e+01 : f32
    %75 = vector.broadcast %cst_120 : f32 to vector<16x1xf32>
    %76 = arith.divf %74, %75 : vector<16x1xf32>
    %77 = vector.broadcast %76 : vector<16x1xf32> to vector<16x32xf32>
    %78 = arith.subf %1, %77 : vector<16x32xf32>
    %79 = arith.mulf %78, %78 : vector<16x32xf32>
    %cst_121 = arith.constant dense<0.000000e+00> : vector<16xf32>
    %80 = vector.multi_reduction <add>, %79, %cst_121 [1] : vector<16x32xf32> to vector<16xf32>
    %81 = vector.shape_cast %80 : vector<16xf32> to vector<16x1xf32>
    %cst_122 = arith.constant 3.200000e+01 : f32
    %82 = vector.broadcast %cst_122 : f32 to vector<16x1xf32>
    %83 = arith.divf %81, %82 : vector<16x1xf32>
    %cst_123 = arith.constant 9.99999974E-6 : f32
    %84 = vector.broadcast %cst_123 : f32 to vector<16x1xf32>
    %85 = arith.addf %83, %84 : vector<16x1xf32>
    %86 = math.rsqrt %85 : vector<16x1xf32>
    %87 = vector.broadcast %86 : vector<16x1xf32> to vector<16x32xf32>
    %88 = arith.mulf %78, %87 : vector<16x32xf32>
    %89 = vector.broadcast %71 : vector<1x32xf32> to vector<16x32xf32>
    %90 = arith.mulf %88, %89 : vector<16x32xf32>
    %91 = vector.broadcast %72 : vector<1x32xf32> to vector<16x32xf32>
    %92 = arith.addf %90, %91 : vector<16x32xf32>
    %cst_124 = arith.constant dense<0.000000e+00> : vector<16x8xf32>
    %93 = tpu.matmul %92, %9, %cst_124 {dimension_numbers = #tpu.dot_dimension_numbers<[1], [0], [0], [1], [0, 0, 1, 1], [], []>} : vector<16x32xf32>, vector<32x8xf32>, vector<16x8xf32> -> vector<16x8xf32>
    %94 = vector.broadcast %33 : vector<1x8xf32> to vector<16x8xf32>
    %95 = arith.addf %93, %94 : vector<16x8xf32>
    %cst_125 = arith.constant dense<0.000000e+00> : vector<16x8xf32>
    %96 = tpu.matmul %92, %17, %cst_125 {dimension_numbers = #tpu.dot_dimension_numbers<[1], [0], [0], [1], [0, 0, 1, 1], [], []>} : vector<16x32xf32>, vector<32x8xf32>, vector<16x8xf32> -> vector<16x8xf32>
    %97 = vector.broadcast %41 : vector<1x8xf32> to vector<16x8xf32>
    %98 = arith.addf %96, %97 : vector<16x8xf32>
    %cst_126 = arith.constant dense<0.000000e+00> : vector<16x8xf32>
    %99 = tpu.matmul %92, %25, %cst_126 {dimension_numbers = #tpu.dot_dimension_numbers<[1], [0], [0], [1], [0, 0, 1, 1], [], []>} : vector<16x32xf32>, vector<32x8xf32>, vector<16x8xf32> -> vector<16x8xf32>
    %100 = vector.broadcast %49 : vector<1x8xf32> to vector<16x8xf32>
    %101 = arith.addf %99, %100 : vector<16x8xf32>
    %102 = vector.shape_cast %95 : vector<16x8xf32> to vector<2x8x8xf32>
    %103 = vector.shape_cast %98 : vector<16x8xf32> to vector<2x8x8xf32>
    %104 = vector.shape_cast %101 : vector<16x8xf32> to vector<2x8x8xf32>
    "tpu.trace_start"() <{level = 10 : i32, message = "bqd,bkd->bqk"}> : () -> ()
    %cst_127 = arith.constant dense<0.000000e+00> : vector<2x8x8xf32>
    %105 = tpu.matmul %102, %103, %cst_127 {dimension_numbers = #tpu.dot_dimension_numbers<[2], [2], [1], [1], [0, 0, 0, 1, 1, 1], [0], [0]>} : vector<2x8x8xf32>, vector<2x8x8xf32>, vector<2x8x8xf32> -> vector<2x8x8xf32>
    "tpu.trace_stop"() : () -> ()
    %cst_128 = arith.constant 0.353553385 : f32
    %106 = vector.broadcast %cst_128 : f32 to vector<2x8x8xf32>
    %107 = arith.mulf %105, %106 : vector<2x8x8xf32>
    %108 = vector.broadcast %70 : vector<1x8x8xf32> to vector<2x8x8xf32>
    %109 = arith.addf %107, %108 : vector<2x8x8xf32>
    %cst_129 = arith.constant dense<0xFF800000> : vector<2x8xf32>
    %110 = vector.multi_reduction <maximumf>, %109, %cst_129 [2] : vector<2x8x8xf32> to vector<2x8xf32>
    %111 = vector.shape_cast %110 : vector<2x8xf32> to vector<2x8x1xf32>
    %112 = vector.broadcast %111 : vector<2x8x1xf32> to vector<2x8x8xf32>
    %113 = arith.subf %109, %112 : vector<2x8x8xf32>
    %114 = math.exp %113 : vector<2x8x8xf32>
    %cst_130 = arith.constant dense<0.000000e+00> : vector<2x8xf32>
    %115 = vector.multi_reduction <add>, %114, %cst_130 [2] : vector<2x8x8xf32> to vector<2x8xf32>
    %116 = vector.shape_cast %115 : vector<2x8xf32> to vector<2x8x1xf32>
    %117 = vector.broadcast %116 : vector<2x8x1xf32> to vector<2x8x8xf32>
    %118 = arith.divf %114, %117 : vector<2x8x8xf32>
    "tpu.trace_start"() <{level = 10 : i32, message = "bqk,bkd->bqd"}> : () -> ()
    %cst_131 = arith.constant dense<0.000000e+00> : vector<2x8x8xf32>
    %119 = tpu.matmul %118, %104, %cst_131 {dimension_numbers = #tpu.dot_dimension_numbers<[2], [1], [1], [2], [0, 0, 0, 1, 1, 2], [0], [0]>} : vector<2x8x8xf32>, vector<2x8x8xf32>, vector<2x8x8xf32> -> vector<2x8x8xf32>
    "tpu.trace_stop"() : () -> ()
    %120 = vector.shape_cast %119 : vector<2x8x8xf32> to vector<16x8xf32>
    %cst_132 = arith.constant dense<0.000000e+00> : vector<16x32xf32>
    %121 = tpu.matmul %120, %57, %cst_132 {dimension_numbers = #tpu.dot_dimension_numbers<[1], [0], [0], [1], [0, 0, 1, 1], [], []>} : vector<16x8xf32>, vector<8x32xf32>, vector<16x32xf32> -> vector<16x32xf32>
    %cst_133 = arith.constant dense<0.000000e+00> : vector<16x8xf32>
    %122 = tpu.matmul %92, %11, %cst_133 {dimension_numbers = #tpu.dot_dimension_numbers<[1], [0], [0], [1], [0, 0, 1, 1], [], []>} : vector<16x32xf32>, vector<32x8xf32>, vector<16x8xf32> -> vector<16x8xf32>
    %123 = vector.broadcast %35 : vector<1x8xf32> to vector<16x8xf32>
    %124 = arith.addf %122, %123 : vector<16x8xf32>
    %cst_134 = arith.constant dense<0.000000e+00> : vector<16x8xf32>
    %125 = tpu.matmul %92, %19, %cst_134 {dimension_numbers = #tpu.dot_dimension_numbers<[1], [0], [0], [1], [0, 0, 1, 1], [], []>} : vector<16x32xf32>, vector<32x8xf32>, vector<16x8xf32> -> vector<16x8xf32>
    %126 = vector.broadcast %43 : vector<1x8xf32> to vector<16x8xf32>
    %127 = arith.addf %125, %126 : vector<16x8xf32>
    %cst_135 = arith.constant dense<0.000000e+00> : vector<16x8xf32>
    %128 = tpu.matmul %92, %27, %cst_135 {dimension_numbers = #tpu.dot_dimension_numbers<[1], [0], [0], [1], [0, 0, 1, 1], [], []>} : vector<16x32xf32>, vector<32x8xf32>, vector<16x8xf32> -> vector<16x8xf32>
    %129 = vector.broadcast %51 : vector<1x8xf32> to vector<16x8xf32>
    %130 = arith.addf %128, %129 : vector<16x8xf32>
    %131 = vector.shape_cast %124 : vector<16x8xf32> to vector<2x8x8xf32>
    %132 = vector.shape_cast %127 : vector<16x8xf32> to vector<2x8x8xf32>
    %133 = vector.shape_cast %130 : vector<16x8xf32> to vector<2x8x8xf32>
    "tpu.trace_start"() <{level = 10 : i32, message = "bqd,bkd->bqk"}> : () -> ()
    %cst_136 = arith.constant dense<0.000000e+00> : vector<2x8x8xf32>
    %134 = tpu.matmul %131, %132, %cst_136 {dimension_numbers = #tpu.dot_dimension_numbers<[2], [2], [1], [1], [0, 0, 0, 1, 1, 1], [0], [0]>} : vector<2x8x8xf32>, vector<2x8x8xf32>, vector<2x8x8xf32> -> vector<2x8x8xf32>
    "tpu.trace_stop"() : () -> ()
    %cst_137 = arith.constant 0.353553385 : f32
    %135 = vector.broadcast %cst_137 : f32 to vector<2x8x8xf32>
    %136 = arith.mulf %134, %135 : vector<2x8x8xf32>
    %137 = vector.broadcast %70 : vector<1x8x8xf32> to vector<2x8x8xf32>
    %138 = arith.addf %136, %137 : vector<2x8x8xf32>
    %cst_138 = arith.constant dense<0xFF800000> : vector<2x8xf32>
    %139 = vector.multi_reduction <maximumf>, %138, %cst_138 [2] : vector<2x8x8xf32> to vector<2x8xf32>
    %140 = vector.shape_cast %139 : vector<2x8xf32> to vector<2x8x1xf32>
    %141 = vector.broadcast %140 : vector<2x8x1xf32> to vector<2x8x8xf32>
    %142 = arith.subf %138, %141 : vector<2x8x8xf32>
    %143 = math.exp %142 : vector<2x8x8xf32>
    %cst_139 = arith.constant dense<0.000000e+00> : vector<2x8xf32>
    %144 = vector.multi_reduction <add>, %143, %cst_139 [2] : vector<2x8x8xf32> to vector<2x8xf32>
    %145 = vector.shape_cast %144 : vector<2x8xf32> to vector<2x8x1xf32>
    %146 = vector.broadcast %145 : vector<2x8x1xf32> to vector<2x8x8xf32>
    %147 = arith.divf %143, %146 : vector<2x8x8xf32>
    "tpu.trace_start"() <{level = 10 : i32, message = "bqk,bkd->bqd"}> : () -> ()
    %cst_140 = arith.constant dense<0.000000e+00> : vector<2x8x8xf32>
    %148 = tpu.matmul %147, %133, %cst_140 {dimension_numbers = #tpu.dot_dimension_numbers<[2], [1], [1], [2], [0, 0, 0, 1, 1, 2], [0], [0]>} : vector<2x8x8xf32>, vector<2x8x8xf32>, vector<2x8x8xf32> -> vector<2x8x8xf32>
    "tpu.trace_stop"() : () -> ()
    %149 = vector.shape_cast %148 : vector<2x8x8xf32> to vector<16x8xf32>
    %cst_141 = arith.constant dense<0.000000e+00> : vector<16x32xf32>
    %150 = tpu.matmul %149, %59, %cst_141 {dimension_numbers = #tpu.dot_dimension_numbers<[1], [0], [0], [1], [0, 0, 1, 1], [], []>} : vector<16x8xf32>, vector<8x32xf32>, vector<16x32xf32> -> vector<16x32xf32>
    %151 = arith.addf %121, %150 : vector<16x32xf32>
    %cst_142 = arith.constant dense<0.000000e+00> : vector<16x8xf32>
    %152 = tpu.matmul %92, %13, %cst_142 {dimension_numbers = #tpu.dot_dimension_numbers<[1], [0], [0], [1], [0, 0, 1, 1], [], []>} : vector<16x32xf32>, vector<32x8xf32>, vector<16x8xf32> -> vector<16x8xf32>
    %153 = vector.broadcast %37 : vector<1x8xf32> to vector<16x8xf32>
    %154 = arith.addf %152, %153 : vector<16x8xf32>
    %cst_143 = arith.constant dense<0.000000e+00> : vector<16x8xf32>
    %155 = tpu.matmul %92, %21, %cst_143 {dimension_numbers = #tpu.dot_dimension_numbers<[1], [0], [0], [1], [0, 0, 1, 1], [], []>} : vector<16x32xf32>, vector<32x8xf32>, vector<16x8xf32> -> vector<16x8xf32>
    %156 = vector.broadcast %45 : vector<1x8xf32> to vector<16x8xf32>
    %157 = arith.addf %155, %156 : vector<16x8xf32>
    %cst_144 = arith.constant dense<0.000000e+00> : vector<16x8xf32>
    %158 = tpu.matmul %92, %29, %cst_144 {dimension_numbers = #tpu.dot_dimension_numbers<[1], [0], [0], [1], [0, 0, 1, 1], [], []>} : vector<16x32xf32>, vector<32x8xf32>, vector<16x8xf32> -> vector<16x8xf32>
    %159 = vector.broadcast %53 : vector<1x8xf32> to vector<16x8xf32>
    %160 = arith.addf %158, %159 : vector<16x8xf32>
    %161 = vector.shape_cast %154 : vector<16x8xf32> to vector<2x8x8xf32>
    %162 = vector.shape_cast %157 : vector<16x8xf32> to vector<2x8x8xf32>
    %163 = vector.shape_cast %160 : vector<16x8xf32> to vector<2x8x8xf32>
    "tpu.trace_start"() <{level = 10 : i32, message = "bqd,bkd->bqk"}> : () -> ()
    %cst_145 = arith.constant dense<0.000000e+00> : vector<2x8x8xf32>
    %164 = tpu.matmul %161, %162, %cst_145 {dimension_numbers = #tpu.dot_dimension_numbers<[2], [2], [1], [1], [0, 0, 0, 1, 1, 1], [0], [0]>} : vector<2x8x8xf32>, vector<2x8x8xf32>, vector<2x8x8xf32> -> vector<2x8x8xf32>
    "tpu.trace_stop"() : () -> ()
    %cst_146 = arith.constant 0.353553385 : f32
    %165 = vector.broadcast %cst_146 : f32 to vector<2x8x8xf32>
    %166 = arith.mulf %164, %165 : vector<2x8x8xf32>
    %167 = vector.broadcast %70 : vector<1x8x8xf32> to vector<2x8x8xf32>
    %168 = arith.addf %166, %167 : vector<2x8x8xf32>
    %cst_147 = arith.constant dense<0xFF800000> : vector<2x8xf32>
    %169 = vector.multi_reduction <maximumf>, %168, %cst_147 [2] : vector<2x8x8xf32> to vector<2x8xf32>
    %170 = vector.shape_cast %169 : vector<2x8xf32> to vector<2x8x1xf32>
    %171 = vector.broadcast %170 : vector<2x8x1xf32> to vector<2x8x8xf32>
    %172 = arith.subf %168, %171 : vector<2x8x8xf32>
    %173 = math.exp %172 : vector<2x8x8xf32>
    %cst_148 = arith.constant dense<0.000000e+00> : vector<2x8xf32>
    %174 = vector.multi_reduction <add>, %173, %cst_148 [2] : vector<2x8x8xf32> to vector<2x8xf32>
    %175 = vector.shape_cast %174 : vector<2x8xf32> to vector<2x8x1xf32>
    %176 = vector.broadcast %175 : vector<2x8x1xf32> to vector<2x8x8xf32>
    %177 = arith.divf %173, %176 : vector<2x8x8xf32>
    "tpu.trace_start"() <{level = 10 : i32, message = "bqk,bkd->bqd"}> : () -> ()
    %cst_149 = arith.constant dense<0.000000e+00> : vector<2x8x8xf32>
    %178 = tpu.matmul %177, %163, %cst_149 {dimension_numbers = #tpu.dot_dimension_numbers<[2], [1], [1], [2], [0, 0, 0, 1, 1, 2], [0], [0]>} : vector<2x8x8xf32>, vector<2x8x8xf32>, vector<2x8x8xf32> -> vector<2x8x8xf32>
    "tpu.trace_stop"() : () -> ()
    %179 = vector.shape_cast %178 : vector<2x8x8xf32> to vector<16x8xf32>
    %cst_150 = arith.constant dense<0.000000e+00> : vector<16x32xf32>
    %180 = tpu.matmul %179, %61, %cst_150 {dimension_numbers = #tpu.dot_dimension_numbers<[1], [0], [0], [1], [0, 0, 1, 1], [], []>} : vector<16x8xf32>, vector<8x32xf32>, vector<16x32xf32> -> vector<16x32xf32>
    %181 = arith.addf %151, %180 : vector<16x32xf32>
    %cst_151 = arith.constant dense<0.000000e+00> : vector<16x8xf32>
    %182 = tpu.matmul %92, %15, %cst_151 {dimension_numbers = #tpu.dot_dimension_numbers<[1], [0], [0], [1], [0, 0, 1, 1], [], []>} : vector<16x32xf32>, vector<32x8xf32>, vector<16x8xf32> -> vector<16x8xf32>
    %183 = vector.broadcast %39 : vector<1x8xf32> to vector<16x8xf32>
    %184 = arith.addf %182, %183 : vector<16x8xf32>
    %cst_152 = arith.constant dense<0.000000e+00> : vector<16x8xf32>
    %185 = tpu.matmul %92, %23, %cst_152 {dimension_numbers = #tpu.dot_dimension_numbers<[1], [0], [0], [1], [0, 0, 1, 1], [], []>} : vector<16x32xf32>, vector<32x8xf32>, vector<16x8xf32> -> vector<16x8xf32>
    %186 = vector.broadcast %47 : vector<1x8xf32> to vector<16x8xf32>
    %187 = arith.addf %185, %186 : vector<16x8xf32>
    %cst_153 = arith.constant dense<0.000000e+00> : vector<16x8xf32>
    %188 = tpu.matmul %92, %31, %cst_153 {dimension_numbers = #tpu.dot_dimension_numbers<[1], [0], [0], [1], [0, 0, 1, 1], [], []>} : vector<16x32xf32>, vector<32x8xf32>, vector<16x8xf32> -> vector<16x8xf32>
    %189 = vector.broadcast %55 : vector<1x8xf32> to vector<16x8xf32>
    %190 = arith.addf %188, %189 : vector<16x8xf32>
    %191 = vector.shape_cast %184 : vector<16x8xf32> to vector<2x8x8xf32>
    %192 = vector.shape_cast %187 : vector<16x8xf32> to vector<2x8x8xf32>
    %193 = vector.shape_cast %190 : vector<16x8xf32> to vector<2x8x8xf32>
    "tpu.trace_start"() <{level = 10 : i32, message = "bqd,bkd->bqk"}> : () -> ()
    %cst_154 = arith.constant dense<0.000000e+00> : vector<2x8x8xf32>
    %194 = tpu.matmul %191, %192, %cst_154 {dimension_numbers = #tpu.dot_dimension_numbers<[2], [2], [1], [1], [0, 0, 0, 1, 1, 1], [0], [0]>} : vector<2x8x8xf32>, vector<2x8x8xf32>, vector<2x8x8xf32> -> vector<2x8x8xf32>
    "tpu.trace_stop"() : () -> ()
    %cst_155 = arith.constant 0.353553385 : f32
    %195 = vector.broadcast %cst_155 : f32 to vector<2x8x8xf32>
    %196 = arith.mulf %194, %195 : vector<2x8x8xf32>
    %197 = vector.broadcast %70 : vector<1x8x8xf32> to vector<2x8x8xf32>
    %198 = arith.addf %196, %197 : vector<2x8x8xf32>
    %cst_156 = arith.constant dense<0xFF800000> : vector<2x8xf32>
    %199 = vector.multi_reduction <maximumf>, %198, %cst_156 [2] : vector<2x8x8xf32> to vector<2x8xf32>
    %200 = vector.shape_cast %199 : vector<2x8xf32> to vector<2x8x1xf32>
    %201 = vector.broadcast %200 : vector<2x8x1xf32> to vector<2x8x8xf32>
    %202 = arith.subf %198, %201 : vector<2x8x8xf32>
    %203 = math.exp %202 : vector<2x8x8xf32>
    %cst_157 = arith.constant dense<0.000000e+00> : vector<2x8xf32>
    %204 = vector.multi_reduction <add>, %203, %cst_157 [2] : vector<2x8x8xf32> to vector<2x8xf32>
    %205 = vector.shape_cast %204 : vector<2x8xf32> to vector<2x8x1xf32>
    %206 = vector.broadcast %205 : vector<2x8x1xf32> to vector<2x8x8xf32>
    %207 = arith.divf %203, %206 : vector<2x8x8xf32>
    "tpu.trace_start"() <{level = 10 : i32, message = "bqk,bkd->bqd"}> : () -> ()
    %cst_158 = arith.constant dense<0.000000e+00> : vector<2x8x8xf32>
    %208 = tpu.matmul %207, %193, %cst_158 {dimension_numbers = #tpu.dot_dimension_numbers<[2], [1], [1], [2], [0, 0, 0, 1, 1, 2], [0], [0]>} : vector<2x8x8xf32>, vector<2x8x8xf32>, vector<2x8x8xf32> -> vector<2x8x8xf32>
    "tpu.trace_stop"() : () -> ()
    %209 = vector.shape_cast %208 : vector<2x8x8xf32> to vector<16x8xf32>
    %cst_159 = arith.constant dense<0.000000e+00> : vector<16x32xf32>
    %210 = tpu.matmul %209, %63, %cst_159 {dimension_numbers = #tpu.dot_dimension_numbers<[1], [0], [0], [1], [0, 0, 1, 1], [], []>} : vector<16x8xf32>, vector<8x32xf32>, vector<16x32xf32> -> vector<16x32xf32>
    %211 = arith.addf %181, %210 : vector<16x32xf32>
    %212 = vector.broadcast %5 : vector<1x32xf32> to vector<16x32xf32>
    %213 = arith.addf %211, %212 : vector<16x32xf32>
    %214 = arith.addf %1, %213 : vector<16x32xf32>
    %215 = vector.extract_strided_slice %4 {offsets = [2, 0], sizes = [1, 32], strides = [1, 1]} : vector<6x32xf32> to vector<1x32xf32>
    %216 = vector.extract_strided_slice %4 {offsets = [3, 0], sizes = [1, 32], strides = [1, 1]} : vector<6x32xf32> to vector<1x32xf32>
    %cst_160 = arith.constant dense<0.000000e+00> : vector<16xf32>
    %217 = vector.multi_reduction <add>, %214, %cst_160 [1] : vector<16x32xf32> to vector<16xf32>
    %218 = vector.shape_cast %217 : vector<16xf32> to vector<16x1xf32>
    %cst_161 = arith.constant 3.200000e+01 : f32
    %219 = vector.broadcast %cst_161 : f32 to vector<16x1xf32>
    %220 = arith.divf %218, %219 : vector<16x1xf32>
    %221 = vector.broadcast %220 : vector<16x1xf32> to vector<16x32xf32>
    %222 = arith.subf %214, %221 : vector<16x32xf32>
    %223 = arith.mulf %222, %222 : vector<16x32xf32>
    %cst_162 = arith.constant dense<0.000000e+00> : vector<16xf32>
    %224 = vector.multi_reduction <add>, %223, %cst_162 [1] : vector<16x32xf32> to vector<16xf32>
    %225 = vector.shape_cast %224 : vector<16xf32> to vector<16x1xf32>
    %cst_163 = arith.constant 3.200000e+01 : f32
    %226 = vector.broadcast %cst_163 : f32 to vector<16x1xf32>
    %227 = arith.divf %225, %226 : vector<16x1xf32>
    %cst_164 = arith.constant 9.99999974E-6 : f32
    %228 = vector.broadcast %cst_164 : f32 to vector<16x1xf32>
    %229 = arith.addf %227, %228 : vector<16x1xf32>
    %230 = math.rsqrt %229 : vector<16x1xf32>
    %231 = vector.broadcast %230 : vector<16x1xf32> to vector<16x32xf32>
    %232 = arith.mulf %222, %231 : vector<16x32xf32>
    %233 = vector.broadcast %215 : vector<1x32xf32> to vector<16x32xf32>
    %234 = arith.mulf %232, %233 : vector<16x32xf32>
    %235 = vector.broadcast %216 : vector<1x32xf32> to vector<16x32xf32>
    %236 = arith.addf %234, %235 : vector<16x32xf32>
    %cst_165 = arith.constant dense<0.000000e+00> : vector<16x8xf32>
    %237 = tpu.matmul %236, %9, %cst_165 {dimension_numbers = #tpu.dot_dimension_numbers<[1], [0], [0], [1], [0, 0, 1, 1], [], []>} : vector<16x32xf32>, vector<32x8xf32>, vector<16x8xf32> -> vector<16x8xf32>
    %238 = vector.broadcast %33 : vector<1x8xf32> to vector<16x8xf32>
    %239 = arith.addf %237, %238 : vector<16x8xf32>
    %cst_166 = arith.constant dense<0.000000e+00> : vector<16x8xf32>
    %240 = tpu.matmul %3, %17, %cst_166 {dimension_numbers = #tpu.dot_dimension_numbers<[1], [0], [0], [1], [0, 0, 1, 1], [], []>} : vector<16x32xf32>, vector<32x8xf32>, vector<16x8xf32> -> vector<16x8xf32>
    %241 = vector.broadcast %41 : vector<1x8xf32> to vector<16x8xf32>
    %242 = arith.addf %240, %241 : vector<16x8xf32>
    %cst_167 = arith.constant dense<0.000000e+00> : vector<16x8xf32>
    %243 = tpu.matmul %3, %25, %cst_167 {dimension_numbers = #tpu.dot_dimension_numbers<[1], [0], [0], [1], [0, 0, 1, 1], [], []>} : vector<16x32xf32>, vector<32x8xf32>, vector<16x8xf32> -> vector<16x8xf32>
    %244 = vector.broadcast %49 : vector<1x8xf32> to vector<16x8xf32>
    %245 = arith.addf %243, %244 : vector<16x8xf32>
    %246 = vector.shape_cast %239 : vector<16x8xf32> to vector<2x8x8xf32>
    %247 = vector.shape_cast %242 : vector<16x8xf32> to vector<2x8x8xf32>
    %248 = vector.shape_cast %245 : vector<16x8xf32> to vector<2x8x8xf32>
    "tpu.trace_start"() <{level = 10 : i32, message = "bqd,bkd->bqk"}> : () -> ()
    %cst_168 = arith.constant dense<0.000000e+00> : vector<2x8x8xf32>
    %249 = tpu.matmul %246, %247, %cst_168 {dimension_numbers = #tpu.dot_dimension_numbers<[2], [2], [1], [1], [0, 0, 0, 1, 1, 1], [0], [0]>} : vector<2x8x8xf32>, vector<2x8x8xf32>, vector<2x8x8xf32> -> vector<2x8x8xf32>
    "tpu.trace_stop"() : () -> ()
    %cst_169 = arith.constant 0.353553385 : f32
    %250 = vector.broadcast %cst_169 : f32 to vector<2x8x8xf32>
    %251 = arith.mulf %249, %250 : vector<2x8x8xf32>
    %cst_170 = arith.constant dense<0xFF800000> : vector<2x8xf32>
    %252 = vector.multi_reduction <maximumf>, %251, %cst_170 [2] : vector<2x8x8xf32> to vector<2x8xf32>
    %253 = vector.shape_cast %252 : vector<2x8xf32> to vector<2x8x1xf32>
    %254 = vector.broadcast %253 : vector<2x8x1xf32> to vector<2x8x8xf32>
    %255 = arith.subf %251, %254 : vector<2x8x8xf32>
    %256 = math.exp %255 : vector<2x8x8xf32>
    %cst_171 = arith.constant dense<0.000000e+00> : vector<2x8xf32>
    %257 = vector.multi_reduction <add>, %256, %cst_171 [2] : vector<2x8x8xf32> to vector<2x8xf32>
    %258 = vector.shape_cast %257 : vector<2x8xf32> to vector<2x8x1xf32>
    %259 = vector.broadcast %258 : vector<2x8x1xf32> to vector<2x8x8xf32>
    %260 = arith.divf %256, %259 : vector<2x8x8xf32>
    "tpu.trace_start"() <{level = 10 : i32, message = "bqk,bkd->bqd"}> : () -> ()
    %cst_172 = arith.constant dense<0.000000e+00> : vector<2x8x8xf32>
    %261 = tpu.matmul %260, %248, %cst_172 {dimension_numbers = #tpu.dot_dimension_numbers<[2], [1], [1], [2], [0, 0, 0, 1, 1, 2], [0], [0]>} : vector<2x8x8xf32>, vector<2x8x8xf32>, vector<2x8x8xf32> -> vector<2x8x8xf32>
    "tpu.trace_stop"() : () -> ()
    %262 = vector.shape_cast %261 : vector<2x8x8xf32> to vector<16x8xf32>
    %cst_173 = arith.constant dense<0.000000e+00> : vector<16x32xf32>
    %263 = tpu.matmul %262, %57, %cst_173 {dimension_numbers = #tpu.dot_dimension_numbers<[1], [0], [0], [1], [0, 0, 1, 1], [], []>} : vector<16x8xf32>, vector<8x32xf32>, vector<16x32xf32> -> vector<16x32xf32>
    %cst_174 = arith.constant dense<0.000000e+00> : vector<16x8xf32>
    %264 = tpu.matmul %236, %11, %cst_174 {dimension_numbers = #tpu.dot_dimension_numbers<[1], [0], [0], [1], [0, 0, 1, 1], [], []>} : vector<16x32xf32>, vector<32x8xf32>, vector<16x8xf32> -> vector<16x8xf32>
    %265 = vector.broadcast %35 : vector<1x8xf32> to vector<16x8xf32>
    %266 = arith.addf %264, %265 : vector<16x8xf32>
    %cst_175 = arith.constant dense<0.000000e+00> : vector<16x8xf32>
    %267 = tpu.matmul %3, %19, %cst_175 {dimension_numbers = #tpu.dot_dimension_numbers<[1], [0], [0], [1], [0, 0, 1, 1], [], []>} : vector<16x32xf32>, vector<32x8xf32>, vector<16x8xf32> -> vector<16x8xf32>
    %268 = vector.broadcast %43 : vector<1x8xf32> to vector<16x8xf32>
    %269 = arith.addf %267, %268 : vector<16x8xf32>
    %cst_176 = arith.constant dense<0.000000e+00> : vector<16x8xf32>
    %270 = tpu.matmul %3, %27, %cst_176 {dimension_numbers = #tpu.dot_dimension_numbers<[1], [0], [0], [1], [0, 0, 1, 1], [], []>} : vector<16x32xf32>, vector<32x8xf32>, vector<16x8xf32> -> vector<16x8xf32>
    %271 = vector.broadcast %51 : vector<1x8xf32> to vector<16x8xf32>
    %272 = arith.addf %270, %271 : vector<16x8xf32>
    %273 = vector.shape_cast %266 : vector<16x8xf32> to vector<2x8x8xf32>
    %274 = vector.shape_cast %269 : vector<16x8xf32> to vector<2x8x8xf32>
    %275 = vector.shape_cast %272 : vector<16x8xf32> to vector<2x8x8xf32>
    "tpu.trace_start"() <{level = 10 : i32, message = "bqd,bkd->bqk"}> : () -> ()
    %cst_177 = arith.constant dense<0.000000e+00> : vector<2x8x8xf32>
    %276 = tpu.matmul %273, %274, %cst_177 {dimension_numbers = #tpu.dot_dimension_numbers<[2], [2], [1], [1], [0, 0, 0, 1, 1, 1], [0], [0]>} : vector<2x8x8xf32>, vector<2x8x8xf32>, vector<2x8x8xf32> -> vector<2x8x8xf32>
    "tpu.trace_stop"() : () -> ()
    %cst_178 = arith.constant 0.353553385 : f32
    %277 = vector.broadcast %cst_178 : f32 to vector<2x8x8xf32>
    %278 = arith.mulf %276, %277 : vector<2x8x8xf32>
    %cst_179 = arith.constant dense<0xFF800000> : vector<2x8xf32>
    %279 = vector.multi_reduction <maximumf>, %278, %cst_179 [2] : vector<2x8x8xf32> to vector<2x8xf32>
    %280 = vector.shape_cast %279 : vector<2x8xf32> to vector<2x8x1xf32>
    %281 = vector.broadcast %280 : vector<2x8x1xf32> to vector<2x8x8xf32>
    %282 = arith.subf %278, %281 : vector<2x8x8xf32>
    %283 = math.exp %282 : vector<2x8x8xf32>
    %cst_180 = arith.constant dense<0.000000e+00> : vector<2x8xf32>
    %284 = vector.multi_reduction <add>, %283, %cst_180 [2] : vector<2x8x8xf32> to vector<2x8xf32>
    %285 = vector.shape_cast %284 : vector<2x8xf32> to vector<2x8x1xf32>
    %286 = vector.broadcast %285 : vector<2x8x1xf32> to vector<2x8x8xf32>
    %287 = arith.divf %283, %286 : vector<2x8x8xf32>
    "tpu.trace_start"() <{level = 10 : i32, message = "bqk,bkd->bqd"}> : () -> ()
    %cst_181 = arith.constant dense<0.000000e+00> : vector<2x8x8xf32>
    %288 = tpu.matmul %287, %275, %cst_181 {dimension_numbers = #tpu.dot_dimension_numbers<[2], [1], [1], [2], [0, 0, 0, 1, 1, 2], [0], [0]>} : vector<2x8x8xf32>, vector<2x8x8xf32>, vector<2x8x8xf32> -> vector<2x8x8xf32>
    "tpu.trace_stop"() : () -> ()
    %289 = vector.shape_cast %288 : vector<2x8x8xf32> to vector<16x8xf32>
    %cst_182 = arith.constant dense<0.000000e+00> : vector<16x32xf32>
    %290 = tpu.matmul %289, %59, %cst_182 {dimension_numbers = #tpu.dot_dimension_numbers<[1], [0], [0], [1], [0, 0, 1, 1], [], []>} : vector<16x8xf32>, vector<8x32xf32>, vector<16x32xf32> -> vector<16x32xf32>
    %291 = arith.addf %263, %290 : vector<16x32xf32>
    %cst_183 = arith.constant dense<0.000000e+00> : vector<16x8xf32>
    %292 = tpu.matmul %236, %13, %cst_183 {dimension_numbers = #tpu.dot_dimension_numbers<[1], [0], [0], [1], [0, 0, 1, 1], [], []>} : vector<16x32xf32>, vector<32x8xf32>, vector<16x8xf32> -> vector<16x8xf32>
    %293 = vector.broadcast %37 : vector<1x8xf32> to vector<16x8xf32>
    %294 = arith.addf %292, %293 : vector<16x8xf32>
    %cst_184 = arith.constant dense<0.000000e+00> : vector<16x8xf32>
    %295 = tpu.matmul %3, %21, %cst_184 {dimension_numbers = #tpu.dot_dimension_numbers<[1], [0], [0], [1], [0, 0, 1, 1], [], []>} : vector<16x32xf32>, vector<32x8xf32>, vector<16x8xf32> -> vector<16x8xf32>
    %296 = vector.broadcast %45 : vector<1x8xf32> to vector<16x8xf32>
    %297 = arith.addf %295, %296 : vector<16x8xf32>
    %cst_185 = arith.constant dense<0.000000e+00> : vector<16x8xf32>
    %298 = tpu.matmul %3, %29, %cst_185 {dimension_numbers = #tpu.dot_dimension_numbers<[1], [0], [0], [1], [0, 0, 1, 1], [], []>} : vector<16x32xf32>, vector<32x8xf32>, vector<16x8xf32> -> vector<16x8xf32>
    %299 = vector.broadcast %53 : vector<1x8xf32> to vector<16x8xf32>
    %300 = arith.addf %298, %299 : vector<16x8xf32>
    %301 = vector.shape_cast %294 : vector<16x8xf32> to vector<2x8x8xf32>
    %302 = vector.shape_cast %297 : vector<16x8xf32> to vector<2x8x8xf32>
    %303 = vector.shape_cast %300 : vector<16x8xf32> to vector<2x8x8xf32>
    "tpu.trace_start"() <{level = 10 : i32, message = "bqd,bkd->bqk"}> : () -> ()
    %cst_186 = arith.constant dense<0.000000e+00> : vector<2x8x8xf32>
    %304 = tpu.matmul %301, %302, %cst_186 {dimension_numbers = #tpu.dot_dimension_numbers<[2], [2], [1], [1], [0, 0, 0, 1, 1, 1], [0], [0]>} : vector<2x8x8xf32>, vector<2x8x8xf32>, vector<2x8x8xf32> -> vector<2x8x8xf32>
    "tpu.trace_stop"() : () -> ()
    %cst_187 = arith.constant 0.353553385 : f32
    %305 = vector.broadcast %cst_187 : f32 to vector<2x8x8xf32>
    %306 = arith.mulf %304, %305 : vector<2x8x8xf32>
    %cst_188 = arith.constant dense<0xFF800000> : vector<2x8xf32>
    %307 = vector.multi_reduction <maximumf>, %306, %cst_188 [2] : vector<2x8x8xf32> to vector<2x8xf32>
    %308 = vector.shape_cast %307 : vector<2x8xf32> to vector<2x8x1xf32>
    %309 = vector.broadcast %308 : vector<2x8x1xf32> to vector<2x8x8xf32>
    %310 = arith.subf %306, %309 : vector<2x8x8xf32>
    %311 = math.exp %310 : vector<2x8x8xf32>
    %cst_189 = arith.constant dense<0.000000e+00> : vector<2x8xf32>
    %312 = vector.multi_reduction <add>, %311, %cst_189 [2] : vector<2x8x8xf32> to vector<2x8xf32>
    %313 = vector.shape_cast %312 : vector<2x8xf32> to vector<2x8x1xf32>
    %314 = vector.broadcast %313 : vector<2x8x1xf32> to vector<2x8x8xf32>
    %315 = arith.divf %311, %314 : vector<2x8x8xf32>
    "tpu.trace_start"() <{level = 10 : i32, message = "bqk,bkd->bqd"}> : () -> ()
    %cst_190 = arith.constant dense<0.000000e+00> : vector<2x8x8xf32>
    %316 = tpu.matmul %315, %303, %cst_190 {dimension_numbers = #tpu.dot_dimension_numbers<[2], [1], [1], [2], [0, 0, 0, 1, 1, 2], [0], [0]>} : vector<2x8x8xf32>, vector<2x8x8xf32>, vector<2x8x8xf32> -> vector<2x8x8xf32>
    "tpu.trace_stop"() : () -> ()
    %317 = vector.shape_cast %316 : vector<2x8x8xf32> to vector<16x8xf32>
    %cst_191 = arith.constant dense<0.000000e+00> : vector<16x32xf32>
    %318 = tpu.matmul %317, %61, %cst_191 {dimension_numbers = #tpu.dot_dimension_numbers<[1], [0], [0], [1], [0, 0, 1, 1], [], []>} : vector<16x8xf32>, vector<8x32xf32>, vector<16x32xf32> -> vector<16x32xf32>
    %319 = arith.addf %291, %318 : vector<16x32xf32>
    %cst_192 = arith.constant dense<0.000000e+00> : vector<16x8xf32>
    %320 = tpu.matmul %236, %15, %cst_192 {dimension_numbers = #tpu.dot_dimension_numbers<[1], [0], [0], [1], [0, 0, 1, 1], [], []>} : vector<16x32xf32>, vector<32x8xf32>, vector<16x8xf32> -> vector<16x8xf32>
    %321 = vector.broadcast %39 : vector<1x8xf32> to vector<16x8xf32>
    %322 = arith.addf %320, %321 : vector<16x8xf32>
    %cst_193 = arith.constant dense<0.000000e+00> : vector<16x8xf32>
    %323 = tpu.matmul %3, %23, %cst_193 {dimension_numbers = #tpu.dot_dimension_numbers<[1], [0], [0], [1], [0, 0, 1, 1], [], []>} : vector<16x32xf32>, vector<32x8xf32>, vector<16x8xf32> -> vector<16x8xf32>
    %324 = vector.broadcast %47 : vector<1x8xf32> to vector<16x8xf32>
    %325 = arith.addf %323, %324 : vector<16x8xf32>
    %cst_194 = arith.constant dense<0.000000e+00> : vector<16x8xf32>
    %326 = tpu.matmul %3, %31, %cst_194 {dimension_numbers = #tpu.dot_dimension_numbers<[1], [0], [0], [1], [0, 0, 1, 1], [], []>} : vector<16x32xf32>, vector<32x8xf32>, vector<16x8xf32> -> vector<16x8xf32>
    %327 = vector.broadcast %55 : vector<1x8xf32> to vector<16x8xf32>
    %328 = arith.addf %326, %327 : vector<16x8xf32>
    %329 = vector.shape_cast %322 : vector<16x8xf32> to vector<2x8x8xf32>
    %330 = vector.shape_cast %325 : vector<16x8xf32> to vector<2x8x8xf32>
    %331 = vector.shape_cast %328 : vector<16x8xf32> to vector<2x8x8xf32>
    "tpu.trace_start"() <{level = 10 : i32, message = "bqd,bkd->bqk"}> : () -> ()
    %cst_195 = arith.constant dense<0.000000e+00> : vector<2x8x8xf32>
    %332 = tpu.matmul %329, %330, %cst_195 {dimension_numbers = #tpu.dot_dimension_numbers<[2], [2], [1], [1], [0, 0, 0, 1, 1, 1], [0], [0]>} : vector<2x8x8xf32>, vector<2x8x8xf32>, vector<2x8x8xf32> -> vector<2x8x8xf32>
    "tpu.trace_stop"() : () -> ()
    %cst_196 = arith.constant 0.353553385 : f32
    %333 = vector.broadcast %cst_196 : f32 to vector<2x8x8xf32>
    %334 = arith.mulf %332, %333 : vector<2x8x8xf32>
    %cst_197 = arith.constant dense<0xFF800000> : vector<2x8xf32>
    %335 = vector.multi_reduction <maximumf>, %334, %cst_197 [2] : vector<2x8x8xf32> to vector<2x8xf32>
    %336 = vector.shape_cast %335 : vector<2x8xf32> to vector<2x8x1xf32>
    %337 = vector.broadcast %336 : vector<2x8x1xf32> to vector<2x8x8xf32>
    %338 = arith.subf %334, %337 : vector<2x8x8xf32>
    %339 = math.exp %338 : vector<2x8x8xf32>
    %cst_198 = arith.constant dense<0.000000e+00> : vector<2x8xf32>
    %340 = vector.multi_reduction <add>, %339, %cst_198 [2] : vector<2x8x8xf32> to vector<2x8xf32>
    %341 = vector.shape_cast %340 : vector<2x8xf32> to vector<2x8x1xf32>
    %342 = vector.broadcast %341 : vector<2x8x1xf32> to vector<2x8x8xf32>
    %343 = arith.divf %339, %342 : vector<2x8x8xf32>
    "tpu.trace_start"() <{level = 10 : i32, message = "bqk,bkd->bqd"}> : () -> ()
    %cst_199 = arith.constant dense<0.000000e+00> : vector<2x8x8xf32>
    %344 = tpu.matmul %343, %331, %cst_199 {dimension_numbers = #tpu.dot_dimension_numbers<[2], [1], [1], [2], [0, 0, 0, 1, 1, 2], [0], [0]>} : vector<2x8x8xf32>, vector<2x8x8xf32>, vector<2x8x8xf32> -> vector<2x8x8xf32>
    "tpu.trace_stop"() : () -> ()
    %345 = vector.shape_cast %344 : vector<2x8x8xf32> to vector<16x8xf32>
    %cst_200 = arith.constant dense<0.000000e+00> : vector<16x32xf32>
    %346 = tpu.matmul %345, %63, %cst_200 {dimension_numbers = #tpu.dot_dimension_numbers<[1], [0], [0], [1], [0, 0, 1, 1], [], []>} : vector<16x8xf32>, vector<8x32xf32>, vector<16x32xf32> -> vector<16x32xf32>
    %347 = arith.addf %319, %346 : vector<16x32xf32>
    %348 = vector.broadcast %5 : vector<1x32xf32> to vector<16x32xf32>
    %349 = arith.addf %347, %348 : vector<16x32xf32>
    %350 = arith.addf %214, %349 : vector<16x32xf32>
    %351 = vector.extract_strided_slice %4 {offsets = [4, 0], sizes = [1, 32], strides = [1, 1]} : vector<6x32xf32> to vector<1x32xf32>
    %352 = vector.extract_strided_slice %4 {offsets = [5, 0], sizes = [1, 32], strides = [1, 1]} : vector<6x32xf32> to vector<1x32xf32>
    %cst_201 = arith.constant dense<0.000000e+00> : vector<16xf32>
    %353 = vector.multi_reduction <add>, %350, %cst_201 [1] : vector<16x32xf32> to vector<16xf32>
    %354 = vector.shape_cast %353 : vector<16xf32> to vector<16x1xf32>
    %cst_202 = arith.constant 3.200000e+01 : f32
    %355 = vector.broadcast %cst_202 : f32 to vector<16x1xf32>
    %356 = arith.divf %354, %355 : vector<16x1xf32>
    %357 = vector.broadcast %356 : vector<16x1xf32> to vector<16x32xf32>
    %358 = arith.subf %350, %357 : vector<16x32xf32>
    %359 = arith.mulf %358, %358 : vector<16x32xf32>
    %cst_203 = arith.constant dense<0.000000e+00> : vector<16xf32>
    %360 = vector.multi_reduction <add>, %359, %cst_203 [1] : vector<16x32xf32> to vector<16xf32>
    %361 = vector.shape_cast %360 : vector<16xf32> to vector<16x1xf32>
    %cst_204 = arith.constant 3.200000e+01 : f32
    %362 = vector.broadcast %cst_204 : f32 to vector<16x1xf32>
    %363 = arith.divf %361, %362 : vector<16x1xf32>
    %cst_205 = arith.constant 9.99999974E-6 : f32
    %364 = vector.broadcast %cst_205 : f32 to vector<16x1xf32>
    %365 = arith.addf %363, %364 : vector<16x1xf32>
    %366 = math.rsqrt %365 : vector<16x1xf32>
    %367 = vector.broadcast %366 : vector<16x1xf32> to vector<16x32xf32>
    %368 = arith.mulf %358, %367 : vector<16x32xf32>
    %369 = vector.broadcast %351 : vector<1x32xf32> to vector<16x32xf32>
    %370 = arith.mulf %368, %369 : vector<16x32xf32>
    %371 = vector.broadcast %352 : vector<1x32xf32> to vector<16x32xf32>
    %372 = arith.addf %370, %371 : vector<16x32xf32>
    %c0_206 = arith.constant 0 : index
    %c0_207 = arith.constant 0 : index
    %373 = vector.load %arg7[%c0_206, %c0_207] : memref<32x64xf32, #tpu.memory_space<vmem>>, vector<32x64xf32>
    %cst_208 = arith.constant dense<0.000000e+00> : vector<16x64xf32>
    %374 = tpu.matmul %372, %373, %cst_208 {dimension_numbers = #tpu.dot_dimension_numbers<[1], [0], [0], [1], [0, 0, 1, 1], [], []>} : vector<16x32xf32>, vector<32x64xf32>, vector<16x64xf32> -> vector<16x64xf32>
    %375 = vector.broadcast %6 : vector<1x64xf32> to vector<16x64xf32>
    %376 = arith.addf %374, %375 : vector<16x64xf32>
    %cst_209 = arith.constant 0.000000e+00 : f32
    %377 = vector.broadcast %cst_209 : f32 to vector<16x64xf32>
    %378 = arith.maximumf %376, %377 : vector<16x64xf32>
    %c0_210 = arith.constant 0 : index
    %c0_211 = arith.constant 0 : index
    %379 = vector.load %arg8[%c0_210, %c0_211] : memref<64x32xf32, #tpu.memory_space<vmem>>, vector<64x32xf32>
    %cst_212 = arith.constant dense<0.000000e+00> : vector<16x32xf32>
    %380 = tpu.matmul %378, %379, %cst_212 {dimension_numbers = #tpu.dot_dimension_numbers<[1], [0], [0], [1], [0, 0, 1, 1], [], []>} : vector<16x64xf32>, vector<64x32xf32>, vector<16x32xf32> -> vector<16x32xf32>
    %381 = arith.addf %350, %380 : vector<16x32xf32>
    %382 = vector.broadcast %7 : vector<1x32xf32> to vector<16x32xf32>
    %383 = arith.addf %381, %382 : vector<16x32xf32>
    %384 = vector.shape_cast %383 : vector<16x32xf32> to vector<2x8x32xf32>
    %c0_213 = arith.constant 0 : index
    %c0_214 = arith.constant 0 : index
    %c0_215 = arith.constant 0 : index
    %385 = vector.load %arg10[%c0_213, %c0_214, %c0_215] : memref<2x8x32xf32, #tpu.memory_space<vmem>>, vector<2x8x32xf32>
    tpu.vector_store %arg10[%c0_213, %c0_214, %c0_215], %384 {strides = array<i32>} : memref<2x8x32xf32, #tpu.memory_space<vmem>>, vector<2x8x32xf32>,
    return
  }
  func.func @transform_0(%arg0: i32) -> (i32, i32, i32) {
    %c0_i32 = arith.constant 0 : i32
    %c0_i32_0 = arith.constant 0 : i32
    %c0_i32_1 = arith.constant 0 : i32
    return %arg0, %c0_i32, %c0_i32_0 : i32, i32, i32
  }
  func.func @transform_1(%arg0: i32) -> (i32, i32, i32) {
    %c0_i32 = arith.constant 0 : i32
    %c0_i32_0 = arith.constant 0 : i32
    %c0_i32_1 = arith.constant 0 : i32
    return %arg0, %c0_i32, %c0_i32_0 : i32, i32, i32
  }
  func.func @transform_2(%arg0: i32) -> (i32, i32) {
    %c0_i32 = arith.constant 0 : i32
    %c0_i32_0 = arith.constant 0 : i32
    %c0_i32_1 = arith.constant 0 : i32
    return %c0_i32, %c0_i32_0 : i32, i32
  }
  func.func @transform_3(%arg0: i32) -> (i32, i32, i32, i32) {
    %c0_i32 = arith.constant 0 : i32
    %c0_i32_0 = arith.constant 0 : i32
    %c0_i32_1 = arith.constant 0 : i32
    %c0_i32_2 = arith.constant 0 : i32
    %c0_i32_3 = arith.constant 0 : i32
    return %c0_i32, %c0_i32_0, %c0_i32_1, %c0_i32_2 : i32, i32, i32, i32
  }
  func.func @transform_4(%arg0: i32) -> (i32, i32, i32, i32) {
    %c0_i32 = arith.constant 0 : i32
    %c0_i32_0 = arith.constant 0 : i32
    %c0_i32_1 = arith.constant 0 : i32
    %c0_i32_2 = arith.constant 0 : i32
    %c0_i32_3 = arith.constant 0 : i32
    return %c0_i32, %c0_i32_0, %c0_i32_1, %c0_i32_2 : i32, i32, i32, i32
  }
  func.func @transform_5(%arg0: i32) -> (i32, i32, i32) {
    %c0_i32 = arith.constant 0 : i32
    %c0_i32_0 = arith.constant 0 : i32
    %c0_i32_1 = arith.constant 0 : i32
    %c0_i32_2 = arith.constant 0 : i32
    return %c0_i32, %c0_i32_0, %c0_i32_1 : i32, i32, i32
  }
  func.func @transform_6(%arg0: i32) -> (i32, i32) {
    %c0_i32 = arith.constant 0 : i32
    %c0_i32_0 = arith.constant 0 : i32
    %c0_i32_1 = arith.constant 0 : i32
    return %c0_i32, %c0_i32_0 : i32, i32
  }
  func.func @transform_7(%arg0: i32) -> (i32, i32) {
    %c0_i32 = arith.constant 0 : i32
    %c0_i32_0 = arith.constant 0 : i32
    %c0_i32_1 = arith.constant 0 : i32
    return %c0_i32, %c0_i32_0 : i32, i32
  }
  func.func @transform_8(%arg0: i32) -> (i32, i32) {
    %c0_i32 = arith.constant 0 : i32
    %c0_i32_0 = arith.constant 0 : i32
    %c0_i32_1 = arith.constant 0 : i32
    return %c0_i32, %c0_i32_0 : i32, i32
  }
  func.func @transform_9(%arg0: i32) -> (i32, i32, i32) {
    %c0_i32 = arith.constant 0 : i32
    %c0_i32_0 = arith.constant 0 : i32
    %c0_i32_1 = arith.constant 0 : i32
    return %arg0, %c0_i32, %c0_i32_0 : i32, i32, i32
  }
}

</mosaic_0001>

<bundles_post_ra>
// kernel: decoder_layer_forward.1
= control target key start
LH: loop header
LB: loop body
LE: loop exit
PB: predicated region body
PF: predicated region fallthrough
CT: control target
= control target key end

     0   :  { %vm136_vm0 = vcmask 261120   ;;  %s7822_s0 = inlined_call_operand.vmem [shape: f32[2,8,32], index: 0, kind: input, shape index: {}]   ;;  %s7823_s1 = inlined_call_operand.vmem [shape: f32[2,8,32], index: 1, kind: input, shape index: {}]   ;;  %s7824_s2 = inlined_call_operand.vmem [shape: f32[6,32], index: 2, kind: input, shape index: {}]   ;;  %s7825_s3 = inlined_call_operand.vmem [shape: f32[3,4,32,8], index: 3, kind: input, shape index: {}]   ;;  %s7826_s4 = inlined_call_operand.vmem [shape: f32[3,4,1,8], index: 4, kind: input, shape index: {}]   ;;  %s7827_s5 = inlined_call_operand.vmem [shape: f32[4,8,32], index: 5, kind: input, shape index: {}]   ;;  %s7828_s6 = inlined_call_operand.vmem [shape: f32[32,64], index: 6, kind: input, shape index: {}]   ;;  %s7829_s7 = inlined_call_operand.vmem [shape: f32[64,32], index: 7, kind: input, shape index: {}]   ;;  %s7830_s8 = inlined_call_operand.vmem [shape: f32[3,64], index: 8, kind: input, shape index: {}]   ;;  %s7831_s9 = inlined_call_operand.hbm [shape: f32[2,8,32], index: 9, kind: output, shape index: {}]  }
   0x1   :  { %v6927_v0 = vld [vmem:[%s7822_s0] sm:$0xff]  ;;  %v6932_v1 = vld [vmem:[%s7822_s0 + $0x8] sm:$0xff] }
   0x2   :  { %14 = vsyncpa [#allocation3], 0  ;;  %v137_v2 = vsel %vm136_vm0, %v6927_v0, 0.0  ;;  %v140_v3 = vsel %vm136_vm0, %v6932_v1, 0.0  ;;  %v41_v14 = vld [vmem:[%s7825_s3] sm:$0xff]  ;;  %v42_v15 = vld [vmem:[%s7825_s3 + $0x8] sm:$0xff]  ;;  %v130_v31 = vlaneseq }
   0x3   :  { %138 = vadd.xlane.f32.xlu0 %v137_v2  ;;  %v6948_v16 = vpack.c.bf16 %v42_v15, %v41_v14  ;;  %v5630_v17 = vld [vmem:[%s7825_s3 + $0x100] sm:$0xff]  ;;  %v5631_v18 = vld [vmem:[%s7825_s3 + $0x108] sm:$0xff]  ;;  %v43_v20 = vld [vmem:[%s7825_s3 + $0x10] sm:$0xff]  ;;  %v6868_v53 = vmov 0.0   ;;  %vm6869_vm1 = vmmov 0   ;;  %vm425_vm2 = vcmask 64512  }
   0x4   :  { %v6956_v19 = vpack.c.bf16 %v5631_v18, %v5630_v17  ;;  %v44_v21 = vld [vmem:[%s7825_s3 + $0x18] sm:$0xff]  ;;  %v5632_v23 = vld [vmem:[%s7825_s3 + $0x110] sm:$0xff]  ;;  %v5614_v26 = vld [vmem:[%s7825_s3 + $0x80] sm:$0xff]  ;;  %v6992_v35 = vshrl.u32 %v130_v31, 7  ;;  %vm5494_vm4 = vcmask 523264  }
   0x5   :  { %6534 = vmatprep.subr.bf16.mxu1 %v6948_v16  ;;  %v6968_v22 = vpack.c.bf16 %v44_v21, %v43_v20  ;;  %v5633_v24 = vld [vmem:[%s7825_s3 + $0x118] sm:$0xff]  ;;  %v5615_v27 = vld [vmem:[%s7825_s3 + $0x88] sm:$0xff]  ;;  %v6998_v38 = vld [vmem:[%s7824_s2] sm:$0x3f] }
   0x6   :  { %6536 = vmatpush3.bf16.msra.mxu1 %v6948_v16  ;;  %6550 = vmatprep.subr.bf16.mxu0 %v6956_v19  ;;  %v6976_v25 = vpack.c.bf16 %v5633_v24, %v5632_v23  ;;  %v6988_v28 = vpack.c.bf16 %v5615_v27, %v5614_v26  ;;  %v166_v37 = vsub.s32 0, %v6992_v35  ;;  %v172_v39 = vsub.s32 1, %v6992_v35  ;;  %v5616_v48 = vld [vmem:[%s7825_s3 + $0x90] sm:$0xff]  ;;  %v5617_v49 = vld [vmem:[%s7825_s3 + $0x98] sm:$0xff]  ;;  %v7039_v54 = vld [vmem:[%s7826_s4 + $0x8] ss:$0 sm:$0xff] }
   0x7   :  { %141 = vadd.xlane.f32.xlu0 %v140_v3  ;;  %6552 = vmatpush3.bf16.msra.mxu0 %v6956_v19  ;;  %v7017_v52 = vpack.c.bf16 %v5617_v49, %v5616_v48  ;;  %v7045_v60 = vld [vmem:[%s7826_s4 + $0x4] ss:$0 sm:$0xff]  ;;  %v7050_v63 = vld [vmem:[%s7826_s4] ss:$0 sm:$0xff] }
   0x8   :  { %6538 = vmatprep.subr.bf16.mxu1 %v6968_v22  ;;  %6554 = vmatprep.subr.bf16.mxu0 %v6976_v25  ;;  %v167_v40 = vrot.slane %v6998_v38, %v166_v37  ;;  %v173_v42 = vrot.slane %v6998_v38, %v172_v39  ;;  %v5603_v37 = vld [vmem:[%s7825_s3 + $0x28] sm:$0xff] }
   0xa   :  { %6540 = vmatpush3.bf16.msra.mxu1 %v6968_v22 }
   0xb   :  { %6556 = vmatpush3.bf16.msra.mxu0 %v6976_v25  ;;  %6542 = vmatprep.subr.bf16.mxu1 %v6988_v28 }
   0xc   :  { %6082 = vmatprep.subr.mxu0 %v6868_v53 }
  0x90   :  { %v139_v4 = vpop.xlane.xlu0 %138 }
  0x91   :  { %v144_v5 = vmul.f32 0.03125, %v139_v4 }
  0x93   :  { %v146_v6 = vsub.f32 %v6927_v0, %v144_v5 }
  0x94   :  { %v142_v7 = vpop.xlane.xlu0 %141 }
  0x95   :  { %v145_v8 = vmul.f32 0.03125, %v142_v7  ;;  %v148_v9 = vmul.f32 %v146_v6, %v146_v6  ;;  %v133_v7 = vand.u32 127, %v130_v31 }
  0x97   :  { %v147_v10 = vsub.f32 %v6932_v1, %v145_v8  ;;  %v150_v11 = vsel %vm136_vm0, %v148_v9, 0.0  ;;  %vm134_vm3 = vcmp.ge.s32.totalorder %v6992_v35, %v133_v7  ;;  %v6870_v9 = vmov -1e+09  }
  0x98   :  { %151 = vadd.xlane.f32.xlu1 %v150_v11 }
  0x99   :  { %v149_v12 = vmul.f32 %v147_v10, %v147_v10 }
  0x9b   :  { %v153_v13 = vsel %vm136_vm0, %v149_v12, 0.0 }
  0x9c   :  { %154 = vadd.xlane.f32.xlu1 %v153_v13 }
 0x125   :  { %v152_v29 = vpop.xlane.xlu1 %151 }
 0x126   :  { %v156_v30 = vmul.f32 0.03125, %v152_v29 }
 0x128   :  { %v158_v32 = vadd.f32 1e-05, %v156_v30 }
 0x129   :  { %v155_v33 = vpop.xlane.xlu1 %154 }
 0x12a   :  { %6767 = vrsqrt.f32 %v158_v32  ;;  %v157_v34 = vmul.f32 0.03125, %v155_v33 }
 0x12c   :  { %v159_v36 = vadd.f32 1e-05, %v157_v34 }
 0x12e   :  { %6769 = vrsqrt.f32 %v159_v36  ;;  %v5602_v36 = vld [vmem:[%s7825_s3 + $0x20] sm:$0xff] }
 0x12f   :  { %v7083_v39 = vpack.c.bf16 %v5603_v37, %v5602_v36 }
 0x134   :  { %v6768_v41 = vpop.eup %6767 }
 0x135   :  { %v162_v43 = vmul.f32 %v6768_v41, %v146_v6  ;;  %v5619_v41 = vld [vmem:[%s7825_s3 + $0xa8] sm:$0xff] }
 0x137   :  { %v168_v44 = vmul.f32 %v167_v40, %v162_v43 }
 0x138   :  { %v6770_v45 = vpop.eup %6769 }
 0x139   :  { %v7003_v46 = vadd.f32 %v173_v42, %v168_v44  ;;  %v163_v47 = vmul.f32 %v6770_v45, %v147_v10  ;;  %v7069_v10 = vsel %vm134_vm3, 0.0, %v6870_v9  ;;  %v5604_v45 = vld [vmem:[%s7825_s3 + $0x30] sm:$0xff] }
 0x13b   :  { %v169_v50 = vmul.f32 %v167_v40, %v163_v47  ;;  %6047 = vmatprep.mubr.msk.f32.mxu1 %vm136_vm0, %v7003_v46  ;;  %6069 = vmatprep.mubr.msk.f32.mxu0 %vm136_vm0, %v7003_v46  ;;  %v5618_v40 = vld [vmem:[%s7825_s3 + $0xa0] sm:$0xff]  ;;  %v5605_v47 = vld [vmem:[%s7825_s3 + $0x38] sm:$0xff] }
 0x13d   :  { %v7015_v51 = vadd.f32 %v173_v42, %v169_v50  ;;  %v7092_v42 = vpack.c.bf16 %v5619_v41, %v5618_v40  ;;  %v7101_v50 = vpack.c.bf16 %v5605_v47, %v5604_v45 }
 0x13f   :  { %6048 = vmatmul.mubr.msk.f32.vlgmr.msra.gmra.mrb[0].mxu1 %vm136_vm0, %v7015_v51  ;;  %6070 = vmatmul.mubr.msk.f32.vlgmr.msra.gmra.mrb[0].mxu0 %vm136_vm0, %v7015_v51 }
 0x140   :  { %6544 = vmatpush3.bf16.msra.mxu1 %v6988_v28  ;;  %6058 = vmatprep.mubr.msk.f32.mxu1 %vm136_vm0, %v7003_v46 }
 0x141   :  { %6546 = vmatprep.subr.bf16.mxu1 %v7017_v52  ;;  %6084 = vmatprep.mubr.msk.f32.mxu0 %vm6869_vm1, %v6868_v53 }
 0x144   :  { %6548 = vmatpush3.bf16.msra.mxu1 %v7017_v52 }
 0x145   :  { %6072 = vmatprep.subr.mxu1 %v6868_v53 }
 0x147   :  { %6059 = vmatmul.mubr.msk.f32.vlgmr.msra.gmra.mrb[2].mxu1 %vm136_vm0, %v7015_v51 }
 0x148   :  { %6074 = vmatprep.mubr.msk.f32.mxu1 %vm6869_vm1, %v6868_v53 }
 0x212   :  { %v6049_v55 = vpop.f32.mrb[0].mxu1  ;;  %v6071_v56 = vpop.f32.mrb[0].mxu0 }
 0x213   :  { %v254_v57 = vpop.f32.mrb[1].mxu1  ;;  %v416_v58 = vpop.f32.mrb[1].mxu0  ;;  %v260_v5 = vadd.f32 %v6049_v55, %v7050_v63  ;;  %v422_v6 = vadd.f32 %v6071_v56, %v7039_v54  ;;  %v5620_v55 = vld [vmem:[%s7825_s3 + $0xb0] sm:$0xff]  ;;  %v5621_v56 = vld [vmem:[%s7825_s3 + $0xb8] sm:$0xff] }
 0x214   :  { %v417_v59 = vadd.f32 %v7039_v54, %v416_v58  ;;  %v255_v3 = vadd.f32 %v7050_v63, %v254_v57  ;;  %v5634_v57 = vld [vmem:[%s7825_s3 + $0x120] sm:$0xff]  ;;  %v5635_v58 = vld [vmem:[%s7825_s3 + $0x128] sm:$0xff] }
 0x216   :  { %6083 = vmatpush3.msra.mxu0 %v417_v59 }
 0x217   :  { %6558 = vmatprep.subr.bf16.mxu0 %v7083_v39 }
 0x21a   :  { %v6060_v61 = vpop.f32.mrb[2].mxu1 }
 0x21b   :  { %v335_v62 = vpop.f32.mrb[3].mxu1  ;;  %v341_v4 = vadd.f32 %v6060_v61, %v7045_v60 }
 0x21c   :  { %v336_v2 = vadd.f32 %v7045_v60, %v335_v62  ;;  %v7120_v62 = vpack.c.bf16 %v5621_v56, %v5620_v55 }
 0x21e   :  { %6073 = vmatpush3.xpose.msk.msra.mxu1 %vm425_vm2, %v336_v2  ;;  %v7122_v2 = vpack.c.bf16 %v5635_v58, %v5634_v57 }
 0x21f   :  { %6077 = vmatprep.subr.mxu1 %v6868_v53 }
 0x221   :  { %6075 = vmatmul.mubr.msk.f32.vlgmr.msra.gmra.mrb[4].mxu1 %vm425_vm2, %v255_v3  ;;  %v5636_v3 = vld [vmem:[%s7825_s3 + $0x130] sm:$0xff] }
 0x222   :  { %6078 = vmatpush3.xpose.msk.msra.mxu1 %vm425_vm2, %v341_v4  ;;  %6079 = vmatprep.mubr.msk.f32.mxu1 %vm6869_vm1, %v6868_v53  ;;  %v5637_v4 = vld [vmem:[%s7825_s3 + $0x138] sm:$0xff] }
 0x223   :  { %6087 = vmatprep.subr.mxu1 %v6868_v53 }
 0x225   :  { %6080 = vmatmul.mubr.msk.f32.vlgmr.msra.gmra.mrb[6].mxu1 %vm425_vm2, %v260_v5  ;;  %v7136_v5 = vpack.c.bf16 %v5637_v4, %v5636_v3  ;;  %v5606_v3 = vld [vmem:[%s7825_s3 + $0x40] sm:$0xff]  ;;  %v5607_v4 = vld [vmem:[%s7825_s3 + $0x48] sm:$0xff] }
 0x226   :  { %6088 = vmatpush3.msra.mxu1 %v422_v6  ;;  %6089 = vmatprep.mubr.msk.f32.mxu1 %vm6869_vm1, %v6868_v53 }
 0x227   :  { %6566 = vmatprep.subr.bf16.mxu1 %v7092_v42 }
 0x2f4   :  { %v498_v8 = vpop.f32.mrb[4].mxu1 }
 0x2f5   :  { %v578_v11 = vmul.f32 0.35355338, %v498_v8  ;;  %v6076_v12 = vpop.f32.mrb[5].mxu1 }
 0x2f7   :  { %v580_v13 = vadd.f32 %v578_v11, %v7069_v10 }
 0x2f8   :  { %v574_v14 = vpop.f32.mrb[6].mxu1 }
 0x2f9   :  { %v579_v15 = vmul.f32 0.35355338, %v574_v14  ;;  %v6081_v17 = vpop.f32.mrb[7].mxu1  ;;  %v582_v18 = vsel %vm425_vm2, %v580_v13, -inf }
 0x2fa   :  { %583 = vmax.xlane.f32.xlu1 %v582_v18  ;;  %v7169_v17 = vld [vmem:[%s7826_s4 + $0x1] ss:$0 sm:$0xff] }
 0x2fb   :  { %v581_v20 = vadd.f32 %v579_v15, %v7069_v10 }
 0x2fd   :  { %v585_v21 = vsel %vm425_vm2, %v581_v20, -inf }
 0x2fe   :  { %586 = vmax.xlane.f32.xlu0 %v585_v21 }
 0x387   :  { %v584_v23 = vpop.xlane.xlu1 %583 }
 0x388   :  { %v588_v24 = vsub.f32 %v580_v13, %v584_v23  ;;  %v7164_v13 = vld [vmem:[%s7826_s4 + $0x5] ss:$0 sm:$0xff] }
 0x38a   :  { %v590_v26 = vmul.f32 1.442695, %v588_v24 }
 0x38b   :  { %v587_v27 = vpop.xlane.xlu0 %586 }
 0x38c   :  { %6771 = vpow2.f32 %v590_v26  ;;  %v589_v29 = vsub.f32 %v581_v20, %v587_v27  ;;  %v7175_v20 = vld [vmem:[%s7826_s4 + $0x9] ss:$0 sm:$0xff] }
 0x38e   :  { %v592_v30 = vmul.f32 1.442695, %v589_v29 }
 0x390   :  { %6773 = vpow2.f32 %v592_v30 }
 0x396   :  { %v6772_v31 = vpop.eup %6771 }
 0x397   :  { %v594_v32 = vsel %vm425_vm2, %v6772_v31, 0.0 }
 0x398   :  { %595 = vadd.xlane.f32.xlu1 %v594_v32 }
 0x39a   :  { %v6774_v33 = vpop.eup %6773 }
 0x39b   :  { %v597_v34 = vsel %vm425_vm2, %v6774_v33, 0.0 }
 0x39c   :  { %598 = vadd.xlane.f32.xlu0 %v597_v34 }
 0x425   :  { %v596_v43 = vpop.xlane.xlu1 %595 }
 0x426   :  { %6775 = vrcp.f32 %v596_v43 }
 0x429   :  { %v599_v44 = vpop.xlane.xlu0 %598 }
 0x42a   :  { %6777 = vrcp.f32 %v599_v44 }
 0x430   :  { %v6776_v48 = vpop.eup %6775 }
 0x431   :  { %v601_v49 = vmul.f32 %v6776_v48, %v6772_v31 }
 0x433   :  { %6085 = vmatmul.mubr.msk.f32.vlgmr.msra.gmra.mrb[2].mxu0 %vm425_vm2, %v601_v49 }
 0x434   :  { %v6778_v59 = vpop.eup %6777  ;;  %6560 = vmatpush3.bf16.msra.mxu0 %v7083_v39  ;;  %6100 = vmatprep.mubr.msk.f32.mxu0 %vm136_vm0, %v7003_v46 }
 0x435   :  { %v603_v61 = vmul.f32 %v6778_v59, %v6774_v33  ;;  %6562 = vmatprep.subr.bf16.mxu0 %v7101_v50 }
 0x437   :  { %6090 = vmatmul.mubr.msk.f32.vlgmr.msra.gmra.mrb[8].mxu1 %vm425_vm2, %v603_v61 }
 0x438   :  { %6564 = vmatpush3.bf16.msra.mxu0 %v7101_v50  ;;  %6568 = vmatpush3.bf16.msra.mxu1 %v7092_v42 }
 0x439   :  { %6111 = vmatprep.mubr.msk.f32.mxu1 %vm136_vm0, %v7003_v46  ;;  %6570 = vmatprep.subr.bf16.mxu1 %v7120_v62 }
 0x43a   :  { %6574 = vmatprep.subr.bf16.mxu0 %v7122_v2 }
 0x43b   :  { %6101 = vmatmul.mubr.msk.f32.vlgmr.msra.gmra.mrb[4].mxu0 %vm136_vm0, %v7015_v51 }
 0x43c   :  { %6572 = vmatpush3.bf16.msra.mxu1 %v7120_v62  ;;  %6576 = vmatpush3.bf16.msra.mxu0 %v7122_v2 }
 0x43d   :  { %6122 = vmatprep.mubr.msk.f32.mxu0 %vm136_vm0, %v7003_v46  ;;  %6578 = vmatprep.subr.bf16.mxu0 %v7136_v5 }
 0x43e   :  { %6125 = vmatprep.subr.mxu1 %v6868_v53 }
 0x43f   :  { %6112 = vmatmul.mubr.msk.f32.vlgmr.msra.gmra.mrb[10].mxu1 %vm136_vm0, %v7015_v51 }
 0x440   :  { %6580 = vmatpush3.bf16.msra.mxu0 %v7136_v5  ;;  %6127 = vmatprep.mubr.msk.f32.mxu1 %vm6869_vm1, %v6868_v53 }
 0x441   :  { %6135 = vmatprep.subr.mxu0 %v6868_v53 }
 0x443   :  { %6123 = vmatmul.mubr.msk.f32.vlgmr.msra.gmra.mrb[6].mxu0 %vm136_vm0, %v7015_v51 }
 0x444   :  { %6137 = vmatprep.mubr.msk.f32.mxu0 %vm6869_vm1, %v6868_v53 }
 0x506   :  { %v7157_v6 = vpop.f32.mrb[2].mxu0 }
 0x507   :  { %v6086_v7 = vpop.f32.mrb[3].mxu0 }
 0x508   :  { %v7204_v7 = vpack.c.bf16 %v5607_v4, %v5606_v3  ;;  %v7312_v4 = vld [vmem:[%s7826_s4 + $0xa] ss:$0 sm:$0xff] }
 0x50a   :  { %v7159_v8 = vpop.f32.mrb[8].mxu1 }
 0x50b   :  { %v6091_v9 = vpop.f32.mrb[9].mxu1 }
 0x50e   :  { %v6102_v11 = vpop.f32.mrb[4].mxu0 }
 0x50f   :  { %v822_v12 = vpop.f32.mrb[5].mxu0  ;;  %v828_v29 = vadd.f32 %v6102_v11, %v7169_v17 }
 0x510   :  { %v823_v23 = vadd.f32 %v7169_v17, %v822_v12 }
 0x512   :  { %v6113_v14 = vpop.f32.mrb[10].mxu1 }
 0x513   :  { %v903_v15 = vpop.f32.mrb[11].mxu1  ;;  %v909_v26 = vadd.f32 %v6113_v14, %v7164_v13 }
 0x514   :  { %v904_v18 = vadd.f32 %v7164_v13, %v903_v15  ;;  %v5608_v15 = vld [vmem:[%s7825_s3 + $0x50] sm:$0xff] }
 0x516   :  { %v6124_v21 = vpop.f32.mrb[6].mxu0  ;;  %6126 = vmatpush3.xpose.msk.msra.mxu1 %vm425_vm2, %v904_v18  ;;  %v5609_v18 = vld [vmem:[%s7825_s3 + $0x58] sm:$0xff] }
 0x517   :  { %v984_v24 = vpop.f32.mrb[7].mxu0  ;;  %6130 = vmatprep.subr.mxu1 %v6868_v53  ;;  %v990_v30 = vadd.f32 %v6124_v21, %v7175_v20 }
 0x518   :  { %v985_v27 = vadd.f32 %v7175_v20, %v984_v24  ;;  %v7214_v24 = vpack.c.bf16 %v5609_v18, %v5608_v15 }
 0x519   :  { %6128 = vmatmul.mubr.msk.f32.vlgmr.msra.gmra.mrb[12].mxu1 %vm425_vm2, %v823_v23 }
 0x51a   :  { %6131 = vmatpush3.xpose.msk.msra.mxu1 %vm425_vm2, %v909_v26  ;;  %6136 = vmatpush3.msra.mxu0 %v985_v27  ;;  %v5638_v26 = vld [vmem:[%s7825_s3 + $0x140] sm:$0xff]  ;;  %v5639_v27 = vld [vmem:[%s7825_s3 + $0x148] sm:$0xff] }
 0x51b   :  { %6132 = vmatprep.mubr.msk.f32.mxu1 %vm6869_vm1, %v6868_v53  ;;  %6140 = vmatprep.subr.mxu1 %v6868_v53 }
 0x51d   :  { %6133 = vmatmul.mubr.msk.f32.vlgmr.msra.gmra.mrb[14].mxu1 %vm425_vm2, %v828_v29  ;;  %v7227_v29 = vpack.c.bf16 %v5639_v27, %v5638_v26 }
 0x51e   :  { %6141 = vmatpush3.msra.mxu1 %v990_v30  ;;  %6142 = vmatprep.mubr.msk.f32.mxu1 %vm6869_vm1, %v6868_v53  ;;  %v5640_v30 = vld [vmem:[%s7825_s3 + $0x150] sm:$0xff] }
 0x51f   :  { %6582 = vmatprep.subr.bf16.mxu1 %v7204_v7 }
 0x5ec   :  { %v1065_v31 = vpop.f32.mrb[12].mxu1 }
 0x5ed   :  { %v1145_v32 = vmul.f32 0.35355338, %v1065_v31  ;;  %v6129_v33 = vpop.f32.mrb[13].mxu1  ;;  %v5641_v31 = vld [vmem:[%s7825_s3 + $0x158] sm:$0xff] }
 0x5ee   :  { %v7254_v33 = vld [vmem:[%s7827_s5 + $0x8] sm:$0xff] }
 0x5ef   :  { %v1147_v34 = vadd.f32 %v1145_v32, %v7069_v10  ;;  %v7237_v32 = vpack.c.bf16 %v5641_v31, %v5640_v30  ;;  %6145 = vmatprep.subr.mxu0 %v7254_v33 }
 0x5f0   :  { %v1141_v36 = vpop.f32.mrb[14].mxu1 }
 0x5f1   :  { %v1146_v37 = vmul.f32 0.35355338, %v1141_v36  ;;  %v6134_v40 = vpop.f32.mrb[15].mxu1  ;;  %v1149_v41 = vsel %vm425_vm2, %v1147_v34, -inf }
 0x5f2   :  { %1150 = vmax.xlane.f32.xlu0 %v1149_v41  ;;  %v5623_v40 = vld [vmem:[%s7825_s3 + $0xc8] sm:$0xff] }
 0x5f3   :  { %v1148_v43 = vadd.f32 %v1146_v37, %v7069_v10  ;;  %v5622_v37 = vld [vmem:[%s7825_s3 + $0xc0] sm:$0xff] }
 0x5f5   :  { %v1152_v44 = vsel %vm425_vm2, %v1148_v43, -inf }
 0x5f6   :  { %1153 = vmax.xlane.f32.xlu1 %v1152_v44 }
 0x67f   :  { %v1151_v45 = vpop.xlane.xlu0 %1150 }
 0x680   :  { %v1155_v47 = vsub.f32 %v1147_v34, %v1151_v45  ;;  %v7261_v34 = vld [vmem:[%s7827_s5] sm:$0xff] }
 0x682   :  { %v1157_v48 = vmul.f32 1.442695, %v1155_v47  ;;  %v5624_v47 = vld [vmem:[%s7825_s3 + $0xd0] sm:$0xff] }
 0x683   :  { %v1154_v49 = vpop.xlane.xlu1 %1153 }
 0x684   :  { %6779 = vpow2.f32 %v1157_v48  ;;  %v1156_v55 = vsub.f32 %v1148_v43, %v1154_v49  ;;  %v7271_v43 = vpack.c.bf16 %v5623_v40, %v5622_v37  ;;  %v5625_v48 = vld [vmem:[%s7825_s3 + $0xd8] sm:$0xff] }
 0x685   :  { %v7284_v49 = vpack.c.bf16 %v5625_v48, %v5624_v47 }
 0x686   :  { %v1159_v56 = vmul.f32 1.442695, %v1156_v55 }
 0x688   :  { %6781 = vpow2.f32 %v1159_v56 }
 0x68e   :  { %v6780_v57 = vpop.eup %6779 }
 0x68f   :  { %v1161_v58 = vsel %vm425_vm2, %v6780_v57, 0.0 }
 0x690   :  { %1162 = vadd.xlane.f32.xlu0 %v1161_v58 }
 0x692   :  { %v6782_v59 = vpop.eup %6781 }
 0x693   :  { %v1164_v61 = vsel %vm425_vm2, %v6782_v59, 0.0 }
 0x694   :  { %1165 = vadd.xlane.f32.xlu1 %v1164_v61 }
 0x71d   :  { %v1163_v9 = vpop.xlane.xlu0 %1162 }
 0x71e   :  { %6783 = vrcp.f32 %v1163_v9 }
 0x721   :  { %v1166_v11 = vpop.xlane.xlu1 %1165 }
 0x722   :  { %6785 = vrcp.f32 %v1166_v11 }
 0x728   :  { %v6784_v12 = vpop.eup %6783 }
 0x729   :  { %v1168_v14 = vmul.f32 %v6784_v12, %v6780_v57 }
 0x72b   :  { %6138 = vmatmul.mubr.msk.f32.vlgmr.msra.gmra.mrb[8].mxu0 %vm425_vm2, %v1168_v14 }
 0x72c   :  { %v6786_v21 = vpop.eup %6785  ;;  %6146 = vmatpush3.msra.mxu0 %v7254_v33 }
 0x72d   :  { %v1170_v23 = vmul.f32 %v6786_v21, %v6782_v59  ;;  %6150 = vmatprep.subr.mxu0 %v7261_v34  ;;  %v7306_v59 = vld [vmem:[%s7826_s4 + $0x2] ss:$0 sm:$0xff] }
 0x72f   :  { %6143 = vmatmul.mubr.msk.f32.vlgmr.msra.gmra.mrb[16].mxu1 %vm425_vm2, %v1170_v23 }
 0x730   :  { %6584 = vmatpush3.bf16.msra.mxu1 %v7204_v7  ;;  %6163 = vmatprep.mubr.msk.f32.mxu1 %vm136_vm0, %v7003_v46 }
 0x731   :  { %6586 = vmatprep.subr.bf16.mxu1 %v7214_v24 }
 0x734   :  { %6588 = vmatpush3.bf16.msra.mxu1 %v7214_v24 }
 0x735   :  { %6598 = vmatprep.subr.bf16.mxu1 %v7227_v29 }
 0x737   :  { %6164 = vmatmul.mubr.msk.f32.vlgmr.msra.gmra.mrb[18].mxu1 %vm136_vm0, %v7015_v51 }
 0x738   :  { %6600 = vmatpush3.bf16.msra.mxu1 %v7227_v29  ;;  %6185 = vmatprep.mubr.msk.f32.mxu1 %vm136_vm0, %v7003_v46 }
 0x739   :  { %6602 = vmatprep.subr.bf16.mxu1 %v7237_v32 }
 0x73c   :  { %6604 = vmatpush3.bf16.msra.mxu1 %v7237_v32 }
 0x73d   :  { %6193 = vmatprep.subr.mxu1 %v6868_v53 }
 0x73f   :  { %6186 = vmatmul.mubr.msk.f32.vlgmr.msra.gmra.mrb[20].mxu1 %vm136_vm0, %v7015_v51 }
 0x740   :  { %6195 = vmatprep.mubr.msk.f32.mxu1 %vm6869_vm1, %v6868_v53 }
 0x7fe   :  { %v1240_v36 = vpop.f32.mrb[8].mxu0 }
 0x7ff   :  { %v6139_v41 = vpop.f32.mrb[9].mxu0  ;;  %6147 = vmatprep.mubr.msk.f32.mxu0 %vm425_vm2, %v1240_v36 }
 0x802   :  { %v1313_v44 = vpop.f32.mrb[16].mxu1 }
 0x803   :  { %v6144_v45 = vpop.f32.mrb[17].mxu1  ;;  %6148 = vmatmul.mubr.msk.f32.vlgmr.msra.gmra.mrb[10].mxu0 %vm425_vm2, %v1313_v44 }
 0x804   :  { %6151 = vmatpush3.msra.mxu0 %v7261_v34  ;;  %6152 = vmatprep.mubr.msk.f32.mxu0 %vm425_vm2, %v7157_v6 }
 0x805   :  { %6590 = vmatprep.subr.bf16.mxu0 %v7271_v43 }
 0x80a   :  { %v6165_v55 = vpop.f32.mrb[18].mxu1 }
 0x80b   :  { %v1551_v56 = vpop.f32.mrb[19].mxu1  ;;  %6153 = vmatmul.mubr.msk.f32.vlgmr.msra.gmra.mrb[10].mxu0 %vm425_vm2, %v7159_v8  ;;  %v7301_v8 = vld [vmem:[%s7826_s4 + $0x6] ss:$0 sm:$0xff]  ;;  %v1557_v11 = vadd.f32 %v6165_v55, %v7306_v59 }
 0x80c   :  { %6592 = vmatpush3.bf16.msra.mxu0 %v7271_v43  ;;  %6174 = vmatprep.mubr.msk.f32.mxu0 %vm136_vm0, %v7003_v46  ;;  %v1552_v12 = vadd.f32 %v7306_v59, %v1551_v56 }
 0x80d   :  { %6594 = vmatprep.subr.bf16.mxu0 %v7284_v49 }
 0x810   :  { %6596 = vmatpush3.bf16.msra.mxu0 %v7284_v49 }
 0x811   :  { %6188 = vmatprep.subr.mxu0 %v6868_v53 }
 0x812   :  { %v6187_v6 = vpop.f32.mrb[20].mxu1 }
 0x813   :  { %6175 = vmatmul.mubr.msk.f32.vlgmr.msra.gmra.mrb[12].mxu0 %vm136_vm0, %v7015_v51  ;;  %v1713_v57 = vpop.f32.mrb[21].mxu1  ;;  %v1719_v14 = vadd.f32 %v6187_v6, %v7312_v4 }
 0x814   :  { %6190 = vmatprep.mubr.msk.f32.mxu0 %vm6869_vm1, %v6868_v53  ;;  %v1714_v15 = vadd.f32 %v7312_v4, %v1713_v57 }
 0x8e6   :  { %v6176_v58 = vpop.f32.mrb[12].mxu0 }
 0x8e7   :  { %v1638_v61 = vadd.f32 %v6176_v58, %v7301_v8  ;;  %v1632_v3 = vpop.f32.mrb[13].mxu0 }
 0x8e8   :  { %v1633_v9 = vadd.f32 %v7301_v8, %v1632_v3  ;;  %v5611_v3 = vld [vmem:[%s7825_s3 + $0x68] sm:$0xff] }
 0x8e9   :  { %6194 = vmatpush3.xpose.msk.msra.mxu1 %vm425_vm2, %v1638_v61  ;;  %v5610_v61 = vld [vmem:[%s7825_s3 + $0x60] sm:$0xff] }
 0x8ea   :  { %6189 = vmatpush3.xpose.msk.msra.mxu0 %vm425_vm2, %v1633_v9  ;;  %6203 = vmatprep.subr.mxu1 %v6868_v53  ;;  %v7341_v9 = vpack.c.bf16 %v5611_v3, %v5610_v61 }
 0x8eb   :  { %6198 = vmatprep.subr.mxu0 %v6868_v53 }
 0x8ec   :  { %6196 = vmatmul.mubr.msk.f32.vlgmr.msra.gmra.mrb[22].mxu1 %vm425_vm2, %v1557_v11  ;;  %v7347_v11 = vld [vmem:[%s7827_s5 + $0x10] sm:$0xff] }
 0x8ed   :  { %6191 = vmatmul.mubr.msk.f32.vlgmr.msra.gmra.mrb[14].mxu0 %vm425_vm2, %v1552_v12  ;;  %6204 = vmatpush3.msra.mxu1 %v1719_v14 }
 0x8ee   :  { %6199 = vmatpush3.msra.mxu0 %v1714_v15  ;;  %6205 = vmatprep.mubr.msk.f32.mxu1 %vm6869_vm1, %v6868_v53  ;;  %v5612_v15 = vld [vmem:[%s7825_s3 + $0x70] sm:$0xff] }
 0x8ef   :  { %6200 = vmatprep.mubr.msk.f32.mxu0 %vm6869_vm1, %v6868_v53  ;;  %6606 = vmatprep.subr.bf16.mxu1 %v7341_v9 }
 0x8f0   :  { %6208 = vmatprep.subr.mxu0 %v7347_v11 }
 0x9bf   :  { %v1870_v18 = vpop.f32.mrb[22].mxu1 }
 0x9c0   :  { %v1875_v21 = vmul.f32 0.35355338, %v1870_v18  ;;  %v1794_v23 = vpop.f32.mrb[14].mxu0  ;;  %v6197_v26 = vpop.f32.mrb[23].mxu1  ;;  %v5613_v18 = vld [vmem:[%s7825_s3 + $0x78] sm:$0xff] }
 0x9c1   :  { %v1874_v27 = vmul.f32 0.35355338, %v1794_v23  ;;  %v6192_v30 = vpop.f32.mrb[15].mxu0 }
 0x9c2   :  { %v1877_v31 = vadd.f32 %v1875_v21, %v7069_v10 }
 0x9c3   :  { %v1876_v36 = vadd.f32 %v1874_v27, %v7069_v10  ;;  %v7356_v27 = vpack.c.bf16 %v5613_v18, %v5612_v15  ;;  %v7427_v15 = vld [vmem:[%s7826_s4 + $0xb] ss:$0 sm:$0xff] }
 0x9c4   :  { %v1881_v37 = vsel %vm425_vm2, %v1877_v31, -inf }
 0x9c5   :  { %1882 = vmax.xlane.f32.xlu1 %v1881_v37  ;;  %v1878_v40 = vsel %vm425_vm2, %v1876_v36, -inf }
 0x9c6   :  { %1879 = vmax.xlane.f32.xlu0 %v1878_v40  ;;  %v5644_v40 = vld [vmem:[%s7825_s3 + $0x170] sm:$0xff] }
 0xa52   :  { %v1883_v41 = vpop.xlane.xlu1 %1882 }
 0xa53   :  { %v1885_v44 = vsub.f32 %v1877_v31, %v1883_v41  ;;  %v1880_v45 = vpop.xlane.xlu0 %1879  ;;  %v5642_v31 = vld [vmem:[%s7825_s3 + $0x160] sm:$0xff]  ;;  %v5645_v41 = vld [vmem:[%s7825_s3 + $0x178] sm:$0xff] }
 0xa54   :  { %v1884_v47 = vsub.f32 %v1876_v36, %v1880_v45  ;;  %v5643_v36 = vld [vmem:[%s7825_s3 + $0x168] sm:$0xff]  ;;  %v5626_v45 = vld [vmem:[%s7825_s3 + $0xe0] sm:$0xff] }
 0xa55   :  { %v1888_v48 = vmul.f32 1.442695, %v1885_v44  ;;  %v7370_v37 = vpack.c.bf16 %v5643_v36, %v5642_v31  ;;  %v7381_v44 = vpack.c.bf16 %v5645_v41, %v5644_v40 }
 0xa56   :  { %v1886_v55 = vmul.f32 1.442695, %v1884_v47  ;;  %v5627_v47 = vld [vmem:[%s7825_s3 + $0xe8] sm:$0xff] }
 0xa57   :  { %6787 = vpow2.f32 %v1888_v48  ;;  %v7401_v48 = vpack.c.bf16 %v5627_v47, %v5626_v45 }
 0xa58   :  { %6789 = vpow2.f32 %v1886_v55  ;;  %v5628_v55 = vld [vmem:[%s7825_s3 + $0xf0] sm:$0xff] }
 0xa61   :  { %v6788_v56 = vpop.eup %6787 }
 0xa62   :  { %v6790_v6 = vpop.eup %6789  ;;  %v1893_v57 = vsel %vm425_vm2, %v6788_v56, 0.0 }
 0xa63   :  { %1894 = vadd.xlane.f32.xlu1 %v1893_v57  ;;  %v1890_v58 = vsel %vm425_vm2, %v6790_v6, 0.0 }
 0xa64   :  { %1891 = vadd.xlane.f32.xlu0 %v1890_v58 }
 0xaf0   :  { %v1895_v12 = vpop.xlane.xlu1 %1894 }
 0xaf1   :  { %6791 = vrcp.f32 %v1895_v12  ;;  %v1892_v14 = vpop.xlane.xlu0 %1891 }
 0xaf2   :  { %6793 = vrcp.f32 %v1892_v14 }
 0xafb   :  { %v6792_v21 = vpop.eup %6791 }
 0xafc   :  { %v6794_v23 = vpop.eup %6793  ;;  %v1899_v26 = vmul.f32 %v6792_v21, %v6788_v56  ;;  %v5629_v56 = vld [vmem:[%s7825_s3 + $0xf8] sm:$0xff] }
 0xafd   :  { %v1897_v30 = vmul.f32 %v6794_v23, %v6790_v6  ;;  %v7410_v61 = vpack.c.bf16 %v5629_v56, %v5628_v55  ;;  %v7434_v23 = vld [vmem:[%s7826_s4 + $0x7] ss:$0 sm:$0xff] }
 0xafe   :  { %6206 = vmatmul.mubr.msk.f32.vlgmr.msra.gmra.mrb[24].mxu1 %vm425_vm2, %v1899_v26 }
 0xaff   :  { %6608 = vmatpush3.bf16.msra.mxu1 %v7341_v9  ;;  %6201 = vmatmul.mubr.msk.f32.vlgmr.msra.gmra.mrb[16].mxu0 %vm425_vm2, %v1897_v30  ;;  %v7439_v30 = vld [vmem:[%s7826_s4 + $0x3] ss:$0 sm:$0xff] }
 0xb00   :  { %6221 = vmatprep.mubr.msk.f32.mxu1 %vm136_vm0, %v7003_v46  ;;  %6610 = vmatprep.subr.bf16.mxu1 %v7356_v27 }
 0xb01   :  { %6209 = vmatpush3.msra.mxu0 %v7347_v11 }
 0xb02   :  { %6614 = vmatprep.subr.bf16.mxu0 %v7401_v48 }
 0xb03   :  { %6612 = vmatpush3.bf16.msra.mxu1 %v7356_v27 }
 0xb04   :  { %6622 = vmatprep.subr.bf16.mxu1 %v7370_v37 }
 0xb06   :  { %6222 = vmatmul.mubr.msk.f32.vlgmr.msra.gmra.mrb[26].mxu1 %vm136_vm0, %v7015_v51 }
 0xb07   :  { %6624 = vmatpush3.bf16.msra.mxu1 %v7370_v37  ;;  %6243 = vmatprep.mubr.msk.f32.mxu1 %vm136_vm0, %v7003_v46 }
 0xb08   :  { %6626 = vmatprep.subr.bf16.mxu1 %v7381_v44 }
 0xb0b   :  { %6628 = vmatpush3.bf16.msra.mxu1 %v7381_v44 }
 0xb0c   :  { %6256 = vmatprep.subr.mxu1 %v6868_v53 }
 0xb0e   :  { %6244 = vmatmul.mubr.msk.f32.vlgmr.msra.gmra.mrb[28].mxu1 %vm136_vm0, %v7015_v51 }
 0xb0f   :  { %6258 = vmatprep.mubr.msk.f32.mxu1 %vm6869_vm1, %v6868_v53 }
 0xbd1   :  { %v2042_v6 = vpop.f32.mrb[24].mxu1 }
 0xbd2   :  { %v1969_v57 = vpop.f32.mrb[16].mxu0  ;;  %v6207_v58 = vpop.f32.mrb[25].mxu1 }
 0xbd3   :  { %v6202_v3 = vpop.f32.mrb[17].mxu0  ;;  %6210 = vmatprep.mubr.msk.f32.mxu0 %vm425_vm2, %v1969_v57 }
 0xbd4   :  { %6211 = vmatmul.mubr.msk.f32.vlgmr.msra.gmra.mrb[10].mxu0 %vm425_vm2, %v2042_v6 }
 0xbd5   :  { %6616 = vmatpush3.bf16.msra.mxu0 %v7401_v48  ;;  %6232 = vmatprep.mubr.msk.f32.mxu0 %vm136_vm0, %v7003_v46 }
 0xbd6   :  { %6618 = vmatprep.subr.bf16.mxu0 %v7410_v61 }
 0xbd9   :  { %v6223_v12 = vpop.f32.mrb[26].mxu1  ;;  %6620 = vmatpush3.bf16.msra.mxu0 %v7410_v61 }
 0xbda   :  { %v2201_v14 = vpop.f32.mrb[27].mxu1  ;;  %6246 = vmatprep.subr.mxu0 %v6868_v53  ;;  %v2207_v41 = vadd.f32 %v6223_v12, %v7439_v30 }
 0xbdb   :  { %v2202_v36 = vadd.f32 %v7439_v30, %v2201_v14 }
 0xbdc   :  { %6233 = vmatmul.mubr.msk.f32.vlgmr.msra.gmra.mrb[18].mxu0 %vm136_vm0, %v7015_v51 }
 0xbdd   :  { %6248 = vmatprep.mubr.msk.f32.mxu0 %vm6869_vm1, %v6868_v53 }
 0xbe1   :  { %v6245_v46 = vpop.f32.mrb[28].mxu1 }
 0xbe2   :  { %v2363_v18 = vpop.f32.mrb[29].mxu1  ;;  %v2369_v45 = vadd.f32 %v6245_v46, %v7427_v15 }
 0xbe3   :  { %v2364_v21 = vadd.f32 %v7427_v15, %v2363_v18 }
 0xbe5   :  { %6257 = vmatpush3.msra.mxu1 %v2364_v21 }
 0xbe6   :  { %6630 = vmatprep.subr.bf16.mxu1 %v6948_v16 }
 0xcaf   :  { %v6234_v51 = vpop.f32.mrb[18].mxu0 }
 0xcb0   :  { %v2282_v26 = vpop.f32.mrb[19].mxu0  ;;  %v2288_v40 = vadd.f32 %v6234_v51, %v7434_v23 }
 0xcb1   :  { %v2283_v31 = vadd.f32 %v7434_v23, %v2282_v26 }
 0xcb3   :  { %6247 = vmatpush3.xpose.msk.msra.mxu0 %vm425_vm2, %v2283_v31 }
 0xcb4   :  { %6251 = vmatprep.subr.mxu0 %v6868_v53 }
 0xcb6   :  { %6249 = vmatmul.mubr.msk.f32.vlgmr.msra.gmra.mrb[20].mxu0 %vm425_vm2, %v2202_v36 }
 0xcb7   :  { %6252 = vmatpush3.xpose.msk.msra.mxu0 %vm425_vm2, %v2288_v40  ;;  %6253 = vmatprep.mubr.msk.f32.mxu0 %vm6869_vm1, %v6868_v53 }
 0xcb8   :  { %6261 = vmatprep.subr.mxu0 %v6868_v53 }
 0xcba   :  { %6254 = vmatmul.mubr.msk.f32.vlgmr.msra.gmra.mrb[22].mxu0 %vm425_vm2, %v2207_v41 }
 0xcbb   :  { %6262 = vmatpush3.msra.mxu0 %v2369_v45  ;;  %6263 = vmatprep.mubr.msk.f32.mxu0 %vm6869_vm1, %v6868_v53 }
 0xd89   :  { %v2444_v47 = vpop.f32.mrb[20].mxu0 }
 0xd8a   :  { %v2524_v55 = vmul.f32 0.35355338, %v2444_v47  ;;  %v6250_v56 = vpop.f32.mrb[21].mxu0 }
 0xd8c   :  { %v2526_v6 = vadd.f32 %v2524_v55, %v7069_v10 }
 0xd8d   :  { %v2520_v57 = vpop.f32.mrb[22].mxu0 }
 0xd8e   :  { %v2525_v58 = vmul.f32 0.35355338, %v2520_v57  ;;  %v6255_v3 = vpop.f32.mrb[23].mxu0  ;;  %v2528_v12 = vsel %vm425_vm2, %v2526_v6, -inf }
 0xd8f   :  { %2529 = vmax.xlane.f32.xlu0 %v2528_v12  ;;  %v7471_v3 = vld [vmem:[%s7827_s5 + $0x18] sm:$0xff] }
 0xd90   :  { %v2527_v14 = vadd.f32 %v2525_v58, %v7069_v10  ;;  %6266 = vmatprep.subr.mxu0 %v7471_v3 }
 0xd92   :  { %v2531_v46 = vsel %vm425_vm2, %v2527_v14, -inf }
 0xd93   :  { %2532 = vmax.xlane.f32.xlu1 %v2531_v46 }
 0xe1c   :  { %v2530_v18 = vpop.xlane.xlu0 %2529 }
 0xe1d   :  { %v2534_v21 = vsub.f32 %v2526_v6, %v2530_v18 }
 0xe1f   :  { %v2536_v51 = vmul.f32 1.442695, %v2534_v21 }
 0xe20   :  { %v2533_v26 = vpop.xlane.xlu1 %2532 }
 0xe21   :  { %6795 = vpow2.f32 %v2536_v51  ;;  %v2535_v31 = vsub.f32 %v2527_v14, %v2533_v26 }
 0xe23   :  { %v2538_v36 = vmul.f32 1.442695, %v2535_v31 }
 0xe25   :  { %6797 = vpow2.f32 %v2538_v36 }
 0xe2b   :  { %v6796_v40 = vpop.eup %6795 }
 0xe2c   :  { %v2540_v41 = vsel %vm425_vm2, %v6796_v40, 0.0 }
 0xe2d   :  { %2541 = vadd.xlane.f32.xlu0 %v2540_v41 }
 0xe2f   :  { %v6798_v45 = vpop.eup %6797 }
 0xe30   :  { %v2543_v47 = vsel %vm425_vm2, %v6798_v45, 0.0 }
 0xe31   :  { %2544 = vadd.xlane.f32.xlu1 %v2543_v47 }
 0xeba   :  { %v2542_v10 = vpop.xlane.xlu0 %2541 }
 0xebb   :  { %6799 = vrcp.f32 %v2542_v10 }
 0xebe   :  { %v2545_v55 = vpop.xlane.xlu1 %2544 }
 0xebf   :  { %6801 = vrcp.f32 %v2545_v55 }
 0xec5   :  { %v6800_v56 = vpop.eup %6799 }
 0xec6   :  { %v2547_v6 = vmul.f32 %v6800_v56, %v6796_v40 }
 0xec8   :  { %6259 = vmatmul.mubr.msk.f32.vlgmr.msra.gmra.mrb[30].mxu1 %vm425_vm2, %v2547_v6 }
 0xec9   :  { %v6802_v57 = vpop.eup %6801  ;;  %6632 = vmatpush3.bf16.msra.mxu1 %v6948_v16 }
 0xeca   :  { %v2549_v58 = vmul.f32 %v6802_v57, %v6798_v45  ;;  %6634 = vmatprep.subr.bf16.mxu1 %v6968_v22  ;;  %v7506_v57 = vld [vmem:[%s7823_s1] sm:$0xff] }
 0xecc   :  { %6264 = vmatmul.mubr.msk.f32.vlgmr.msra.gmra.mrb[24].mxu0 %vm425_vm2, %v2549_v58  ;;  %v7511_v58 = vld [vmem:[%s7823_s1 + $0x8] sm:$0xff] }
 0xecd   :  { %6636 = vmatpush3.bf16.msra.mxu1 %v6968_v22  ;;  %6267 = vmatpush3.msra.mxu0 %v7471_v3  ;;  %v7485_v22 = vld [vmem:[%s7830_s8] ss:$0 sm:$0xff] }
 0xece   :  { %6646 = vmatprep.subr.bf16.mxu1 %v6956_v19  ;;  %6638 = vmatprep.subr.bf16.mxu0 %v6988_v28 }
 0xf9b   :  { %v2619_v16 = vpop.f32.mrb[30].mxu1 }
 0xf9c   :  { %v6260_v12 = vpop.f32.mrb[31].mxu1  ;;  %6268 = vmatprep.mubr.msk.f32.mxu0 %vm425_vm2, %v2619_v16 }
 0xf9f   :  { %v2692_v14 = vpop.f32.mrb[24].mxu0 }
 0xfa0   :  { %v6265_v46 = vpop.f32.mrb[25].mxu0  ;;  %6269 = vmatmul.mubr.msk.f32.vlgmr.msra.gmra.mrb[10].mxu0 %vm425_vm2, %v2692_v14 }
 0xfa1   :  { %6640 = vmatpush3.bf16.msra.mxu0 %v6988_v28  ;;  %6290 = vmatprep.mubr.msk.f32.mxu0 %vm136_vm0, %v7506_v57 }
 0xfa2   :  { %6642 = vmatprep.subr.bf16.mxu0 %v7017_v52 }
 0xfa5   :  { %6644 = vmatpush3.bf16.msra.mxu0 %v7017_v52 }
 0xfa6   :  { %6304 = vmatprep.subr.mxu0 %v6868_v53 }
 0xfa8   :  { %6291 = vmatmul.mubr.msk.f32.vlgmr.msra.gmra.mrb[26].mxu0 %vm136_vm0, %v7511_v58 }
 0xfa9   :  { %6306 = vmatprep.mubr.msk.f32.mxu0 %vm6869_vm1, %v6868_v53 }
0x1073   :  { %v6270_v18 = vpop.f32.mrb[10].mxu0 }
0x1074   :  { %v2784_v21 = vadd.f32 %v6270_v18, %v7485_v22  ;;  %v2768_v51 = vpop.f32.mrb[11].mxu0 }
0x1075   :  { %v2783_v26 = vadd.f32 %v7485_v22, %v2768_v51  ;;  %v2815_v51 = vsub.s32 2, %v6992_v35 }
0x1076   :  { %v7490_v31 = vadd.f32 %v2784_v21, %v6932_v1 }
0x1077   :  { %v7493_v28 = vadd.f32 %v2783_v26, %v6927_v0  ;;  %v2821_v26 = vsub.s32 3, %v6992_v35 }
0x1078   :  { %v2790_v52 = vsel %vm136_vm0, %v7490_v31, 0.0 }
0x1079   :  { %2791 = vadd.xlane.f32.xlu1 %v2790_v52  ;;  %v2787_v36 = vsel %vm136_vm0, %v7493_v28, 0.0  ;;  %v2816_v52 = vrot.slane %v6998_v38, %v2815_v51 }
0x107a   :  { %2788 = vadd.xlane.f32.xlu0 %v2787_v36 }
0x1106   :  { %v2792_v40 = vpop.xlane.xlu1 %2791 }
0x1107   :  { %v2794_v41 = vmul.f32 0.03125, %v2792_v40  ;;  %v2789_v45 = vpop.xlane.xlu0 %2788 }
0x1108   :  { %v2793_v47 = vmul.f32 0.03125, %v2789_v45 }
0x1109   :  { %v2796_v10 = vsub.f32 %v7490_v31, %v2794_v41 }
0x110a   :  { %v2795_v1 = vsub.f32 %v7493_v28, %v2793_v47  ;;  %v2822_v47 = vrot.slane %v6998_v38, %v2821_v26  ;;  %v6292_v38 = vpop.f32.mrb[26].mxu0 }
0x110b   :  { %v2798_v55 = vmul.f32 %v2796_v10, %v2796_v10 }
0x110c   :  { %v2797_v56 = vmul.f32 %v2795_v1, %v2795_v1 }
0x110d   :  { %v2802_v0 = vsel %vm136_vm0, %v2798_v55, 0.0 }
0x110e   :  { %2803 = vadd.xlane.f32.xlu1 %v2802_v0  ;;  %v2799_v6 = vsel %vm136_vm0, %v2797_v56, 0.0 }
0x110f   :  { %2800 = vadd.xlane.f32.xlu0 %v2799_v6 }
0x119b   :  { %v2804_v16 = vpop.xlane.xlu1 %2803 }
0x119c   :  { %v2806_v12 = vmul.f32 0.03125, %v2804_v16  ;;  %v2801_v14 = vpop.xlane.xlu0 %2800 }
0x119d   :  { %v2805_v46 = vmul.f32 0.03125, %v2801_v14 }
0x119e   :  { %v2808_v18 = vadd.f32 1e-05, %v2806_v12 }
0x119f   :  { %v2807_v21 = vadd.f32 1e-05, %v2805_v46 }
0x11a0   :  { %6803 = vrsqrt.f32 %v2808_v18 }
0x11a1   :  { %6805 = vrsqrt.f32 %v2807_v21 }
0x11aa   :  { %v6804_v36 = vpop.eup %6803 }
0x11ab   :  { %v6806_v40 = vpop.eup %6805  ;;  %v2812_v41 = vmul.f32 %v6804_v36, %v2796_v10  ;;  %v2984_v10 = vadd.f32 %v6292_v38, %v7045_v60 }
0x11ac   :  { %v2811_v45 = vmul.f32 %v6806_v40, %v2795_v1  ;;  %v2978_v1 = vpop.f32.mrb[27].mxu0 }
0x11ad   :  { %v2818_v55 = vmul.f32 %v2816_v52, %v2812_v41 }
0x11ae   :  { %v2817_v56 = vmul.f32 %v2816_v52, %v2811_v45 }
0x11af   :  { %v7525_v6 = vadd.f32 %v2822_v47, %v2818_v55 }
0x11b0   :  { %v7523_v0 = vadd.f32 %v2822_v47, %v2817_v56 }
0x11b2   :  { %6279 = vmatprep.mubr.msk.f32.mxu1 %vm136_vm0, %v7523_v0 }
0x11b3   :  { %6280 = vmatmul.mubr.msk.f32.vlgmr.msra.gmra.mrb[32].mxu1 %vm136_vm0, %v7525_v6 }
0x11b4   :  { %6648 = vmatpush3.bf16.msra.mxu1 %v6956_v19  ;;  %6301 = vmatprep.mubr.msk.f32.mxu1 %vm136_vm0, %v7506_v57  ;;  %v2979_v19 = vadd.f32 %v7045_v60, %v2978_v1 }
0x11b5   :  { %6650 = vmatprep.subr.bf16.mxu1 %v6976_v25 }
0x11b6   :  { %6305 = vmatpush3.xpose.msk.msra.mxu0 %vm425_vm2, %v2979_v19 }
0x11b7   :  { %6314 = vmatprep.subr.mxu0 %v6868_v53 }
0x11b8   :  { %6652 = vmatpush3.bf16.msra.mxu1 %v6976_v25 }
0x11b9   :  { %6309 = vmatprep.subr.mxu1 %v6868_v53 }
0x11bb   :  { %6302 = vmatmul.mubr.msk.f32.vlgmr.msra.gmra.mrb[34].mxu1 %vm136_vm0, %v7511_v58 }
0x11bc   :  { %6311 = vmatprep.mubr.msk.f32.mxu1 %vm6869_vm1, %v6868_v53 }
0x11c1   :  { %6310 = vmatpush3.xpose.msk.msra.mxu1 %vm425_vm2, %v2984_v10 }
0x11c2   :  { %6319 = vmatprep.subr.mxu1 %v6868_v53 }
0x1286   :  { %v6281_v25 = vpop.f32.mrb[32].mxu1 }
0x1287   :  { %v2903_v16 = vadd.f32 %v6281_v25, %v7050_v63  ;;  %v2897_v12 = vpop.f32.mrb[33].mxu1 }
0x1288   :  { %v2898_v14 = vadd.f32 %v7050_v63, %v2897_v12 }
0x1289   :  { %6312 = vmatmul.mubr.msk.f32.vlgmr.msra.gmra.mrb[36].mxu1 %vm425_vm2, %v2903_v16 }
0x128a   :  { %6307 = vmatmul.mubr.msk.f32.vlgmr.msra.gmra.mrb[28].mxu0 %vm425_vm2, %v2898_v14  ;;  %6321 = vmatprep.mubr.msk.f32.mxu1 %vm6869_vm1, %v6868_v53 }
0x128b   :  { %6316 = vmatprep.mubr.msk.f32.mxu0 %vm6869_vm1, %v6868_v53 }
0x128e   :  { %v6303_v60 = vpop.f32.mrb[34].mxu1 }
0x128f   :  { %v3059_v46 = vadd.f32 %v6303_v60, %v7039_v54  ;;  %v3053_v18 = vpop.f32.mrb[35].mxu1 }
0x1290   :  { %v3054_v21 = vadd.f32 %v7039_v54, %v3053_v18 }
0x1291   :  { %6320 = vmatpush3.msra.mxu1 %v3059_v46 }
0x1292   :  { %6315 = vmatpush3.msra.mxu0 %v3054_v21  ;;  %6662 = vmatprep.subr.bf16.mxu1 %v7092_v42 }
0x1293   :  { %6654 = vmatprep.subr.bf16.mxu0 %v7083_v39 }
0x135c   :  { %v3210_v63 = vpop.f32.mrb[36].mxu1 }
0x135d   :  { %v3215_v51 = vmul.f32 0.35355338, %v3210_v63  ;;  %v3134_v26 = vpop.f32.mrb[28].mxu0  ;;  %v6313_v52 = vpop.f32.mrb[37].mxu1 }
0x135e   :  { %v3214_v36 = vmul.f32 0.35355338, %v3134_v26  ;;  %v6308_v40 = vpop.f32.mrb[29].mxu0 }
0x135f   :  { %v3219_v41 = vsel %vm425_vm2, %v3215_v51, -inf }
0x1360   :  { %3220 = vmax.xlane.f32.xlu0 %v3219_v41  ;;  %v3216_v45 = vsel %vm425_vm2, %v3214_v36, -inf }
0x1361   :  { %3217 = vmax.xlane.f32.xlu1 %v3216_v45 }
0x13ed   :  { %v3221_v47 = vpop.xlane.xlu0 %3220 }
0x13ee   :  { %v3223_v54 = vsub.f32 %v3215_v51, %v3221_v47  ;;  %v3218_v55 = vpop.xlane.xlu1 %3217 }
0x13ef   :  { %v3222_v56 = vsub.f32 %v3214_v36, %v3218_v55 }
0x13f0   :  { %v3226_v38 = vmul.f32 1.442695, %v3223_v54 }
0x13f1   :  { %v3224_v10 = vmul.f32 1.442695, %v3222_v56 }
0x13f2   :  { %6807 = vpow2.f32 %v3226_v38 }
0x13f3   :  { %6809 = vpow2.f32 %v3224_v10 }
0x13fc   :  { %v6808_v1 = vpop.eup %6807 }
0x13fd   :  { %v6810_v19 = vpop.eup %6809  ;;  %v3231_v25 = vsel %vm425_vm2, %v6808_v1, 0.0 }
0x13fe   :  { %3232 = vadd.xlane.f32.xlu0 %v3231_v25  ;;  %v3228_v16 = vsel %vm425_vm2, %v6810_v19, 0.0 }
0x13ff   :  { %3229 = vadd.xlane.f32.xlu1 %v3228_v16 }
0x148b   :  { %v3233_v12 = vpop.xlane.xlu0 %3232 }
0x148c   :  { %6811 = vrcp.f32 %v3233_v12  ;;  %v3230_v14 = vpop.xlane.xlu1 %3229 }
0x148d   :  { %6813 = vrcp.f32 %v3230_v14 }
0x1496   :  { %v6812_v60 = vpop.eup %6811 }
0x1497   :  { %v6814_v46 = vpop.eup %6813  ;;  %v3237_v18 = vmul.f32 %v6812_v60, %v6808_v1 }
0x1498   :  { %v3235_v21 = vmul.f32 %v6814_v46, %v6810_v19 }
0x1499   :  { %6322 = vmatmul.mubr.msk.f32.vlgmr.msra.gmra.mrb[38].mxu1 %vm425_vm2, %v3237_v18 }
0x149a   :  { %6664 = vmatpush3.bf16.msra.mxu1 %v7092_v42  ;;  %6317 = vmatmul.mubr.msk.f32.vlgmr.msra.gmra.mrb[30].mxu0 %vm425_vm2, %v3235_v21 }
0x149b   :  { %6656 = vmatpush3.bf16.msra.mxu0 %v7083_v39  ;;  %6332 = vmatprep.mubr.msk.f32.mxu0 %vm136_vm0, %v7523_v0 }
0x149c   :  { %6666 = vmatprep.subr.bf16.mxu1 %v7120_v62  ;;  %6658 = vmatprep.subr.bf16.mxu0 %v7101_v50 }
0x149d   :  { %6343 = vmatprep.mubr.msk.f32.mxu1 %vm136_vm0, %v7506_v57 }
0x149e   :  { %6668 = vmatpush3.bf16.msra.mxu1 %v7120_v62 }
0x149f   :  { %6660 = vmatpush3.bf16.msra.mxu0 %v7101_v50  ;;  %6357 = vmatprep.subr.mxu1 %v6868_v53 }
0x14a0   :  { %6670 = vmatprep.subr.bf16.mxu0 %v7122_v2 }
0x14a1   :  { %6344 = vmatmul.mubr.msk.f32.vlgmr.msra.gmra.mrb[40].mxu1 %vm136_vm0, %v7511_v58 }
0x14a2   :  { %6333 = vmatmul.mubr.msk.f32.vlgmr.msra.gmra.mrb[32].mxu0 %vm136_vm0, %v7525_v6  ;;  %6359 = vmatprep.mubr.msk.f32.mxu1 %vm6869_vm1, %v6868_v53 }
0x14a3   :  { %6672 = vmatpush3.bf16.msra.mxu0 %v7122_v2  ;;  %6354 = vmatprep.mubr.msk.f32.mxu0 %vm136_vm0, %v7506_v57 }
0x14a4   :  { %6674 = vmatprep.subr.bf16.mxu0 %v7136_v5 }
0x14a7   :  { %6676 = vmatpush3.bf16.msra.mxu0 %v7136_v5 }
0x14a8   :  { %6367 = vmatprep.subr.mxu0 %v6868_v53 }
0x14aa   :  { %6355 = vmatmul.mubr.msk.f32.vlgmr.msra.gmra.mrb[34].mxu0 %vm136_vm0, %v7511_v58 }
0x14ab   :  { %6369 = vmatprep.mubr.msk.f32.mxu0 %vm6869_vm1, %v6868_v53 }
0x156c   :  { %v7593_v39 = vpop.f32.mrb[38].mxu1 }
0x156d   :  { %v7595_v42 = vpop.f32.mrb[30].mxu0  ;;  %v6323_v50 = vpop.f32.mrb[39].mxu1 }
0x156e   :  { %v6318_v62 = vpop.f32.mrb[31].mxu0 }
0x1574   :  { %v6345_v2 = vpop.f32.mrb[40].mxu1 }
0x1575   :  { %v6334_v63 = vpop.f32.mrb[32].mxu0  ;;  %v3525_v51 = vpop.f32.mrb[41].mxu1  ;;  %v3531_v36 = vadd.f32 %v6345_v2, %v7164_v13 }
0x1576   :  { %v3526_v26 = vadd.f32 %v7164_v13, %v3525_v51  ;;  %v3450_v5 = vpop.f32.mrb[33].mxu0  ;;  %v3456_v40 = vadd.f32 %v6334_v63, %v7169_v17 }
0x1577   :  { %v3451_v52 = vadd.f32 %v7169_v17, %v3450_v5 }
0x1578   :  { %6358 = vmatpush3.xpose.msk.msra.mxu1 %vm425_vm2, %v3526_v26 }
0x1579   :  { %6362 = vmatprep.subr.mxu1 %v6868_v53 }
0x157b   :  { %6360 = vmatmul.mubr.msk.f32.vlgmr.msra.gmra.mrb[42].mxu1 %vm425_vm2, %v3451_v52 }
0x157c   :  { %6363 = vmatpush3.xpose.msk.msra.mxu1 %vm425_vm2, %v3531_v36  ;;  %6364 = vmatprep.mubr.msk.f32.mxu1 %vm6869_vm1, %v6868_v53 }
0x157d   :  { %6372 = vmatprep.subr.mxu1 %v6868_v53  ;;  %v6356_v18 = vpop.f32.mrb[34].mxu0 }
0x157e   :  { %v3600_v21 = vpop.f32.mrb[35].mxu0  ;;  %v3606_v62 = vadd.f32 %v6356_v18, %v7175_v20 }
0x157f   :  { %6365 = vmatmul.mubr.msk.f32.vlgmr.msra.gmra.mrb[44].mxu1 %vm425_vm2, %v3456_v40  ;;  %v3601_v50 = vadd.f32 %v7175_v20, %v3600_v21 }
0x1580   :  { %6374 = vmatprep.mubr.msk.f32.mxu1 %vm6869_vm1, %v6868_v53  ;;  %6373 = vmatpush3.msra.mxu1 %v3606_v62 }
0x1581   :  { %6368 = vmatpush3.msra.mxu0 %v3601_v50  ;;  %6678 = vmatprep.subr.bf16.mxu1 %v7204_v7 }
0x1582   :  { %6377 = vmatprep.subr.mxu0 %v7254_v33 }
0x164e   :  { %v3681_v41 = vpop.f32.mrb[42].mxu1 }
0x164f   :  { %v3761_v45 = vmul.f32 0.35355338, %v3681_v41  ;;  %v6361_v47 = vpop.f32.mrb[43].mxu1 }
0x1651   :  { %v3763_v13 = vsel %vm425_vm2, %v3761_v45, -inf }
0x1652   :  { %3764 = vmax.xlane.f32.xlu0 %v3763_v13  ;;  %v3757_v54 = vpop.f32.mrb[44].mxu1 }
0x1653   :  { %v3762_v55 = vmul.f32 0.35355338, %v3757_v54  ;;  %v6366_v56 = vpop.f32.mrb[45].mxu1 }
0x1655   :  { %v3766_v38 = vsel %vm425_vm2, %v3762_v55, -inf }
0x1656   :  { %3767 = vmax.xlane.f32.xlu1 %v3766_v38 }
0x16df   :  { %v3765_v17 = vpop.xlane.xlu0 %3764 }
0x16e0   :  { %v3769_v10 = vsub.f32 %v3761_v45, %v3765_v17 }
0x16e2   :  { %v3771_v1 = vmul.f32 1.442695, %v3769_v10 }
0x16e3   :  { %v3768_v19 = vpop.xlane.xlu1 %3767 }
0x16e4   :  { %6815 = vpow2.f32 %v3771_v1  ;;  %v3770_v25 = vsub.f32 %v3762_v55, %v3768_v19 }
0x16e6   :  { %v3773_v16 = vmul.f32 1.442695, %v3770_v25 }
0x16e8   :  { %6817 = vpow2.f32 %v3773_v16 }
0x16ee   :  { %v6816_v12 = vpop.eup %6815 }
0x16ef   :  { %v3775_v14 = vsel %vm425_vm2, %v6816_v12, 0.0 }
0x16f0   :  { %3776 = vadd.xlane.f32.xlu0 %v3775_v14 }
0x16f2   :  { %v6818_v60 = vpop.eup %6817 }
0x16f3   :  { %v3778_v46 = vsel %vm425_vm2, %v6818_v60, 0.0 }
0x16f4   :  { %3779 = vadd.xlane.f32.xlu1 %v3778_v46 }
0x177d   :  { %v3777_v2 = vpop.xlane.xlu0 %3776 }
0x177e   :  { %6819 = vrcp.f32 %v3777_v2 }
0x1781   :  { %v3780_v63 = vpop.xlane.xlu1 %3779 }
0x1782   :  { %6821 = vrcp.f32 %v3780_v63 }
0x1788   :  { %v6820_v51 = vpop.eup %6819 }
0x1789   :  { %v3782_v26 = vmul.f32 %v6820_v51, %v6816_v12 }
0x178b   :  { %6370 = vmatmul.mubr.msk.f32.vlgmr.msra.gmra.mrb[36].mxu0 %vm425_vm2, %v3782_v26 }
0x178c   :  { %v6822_v5 = vpop.eup %6821  ;;  %6378 = vmatpush3.msra.mxu0 %v7254_v33 }
0x178d   :  { %v3784_v52 = vmul.f32 %v6822_v5, %v6818_v60  ;;  %6382 = vmatprep.subr.mxu0 %v7261_v34 }
0x178f   :  { %6375 = vmatmul.mubr.msk.f32.vlgmr.msra.gmra.mrb[46].mxu1 %vm425_vm2, %v3784_v52 }
0x1790   :  { %6680 = vmatpush3.bf16.msra.mxu1 %v7204_v7  ;;  %6395 = vmatprep.mubr.msk.f32.mxu1 %vm136_vm0, %v7523_v0 }
0x1791   :  { %6682 = vmatprep.subr.bf16.mxu1 %v7214_v24 }
0x1794   :  { %6684 = vmatpush3.bf16.msra.mxu1 %v7214_v24 }
0x1795   :  { %6694 = vmatprep.subr.bf16.mxu1 %v7227_v29 }
0x1797   :  { %6396 = vmatmul.mubr.msk.f32.vlgmr.msra.gmra.mrb[48].mxu1 %vm136_vm0, %v7525_v6 }
0x1798   :  { %6696 = vmatpush3.bf16.msra.mxu1 %v7227_v29  ;;  %6417 = vmatprep.mubr.msk.f32.mxu1 %vm136_vm0, %v7506_v57 }
0x1799   :  { %6698 = vmatprep.subr.bf16.mxu1 %v7237_v32 }
0x179c   :  { %6700 = vmatpush3.bf16.msra.mxu1 %v7237_v32 }
0x179d   :  { %6425 = vmatprep.subr.mxu1 %v6868_v53 }
0x179f   :  { %6418 = vmatmul.mubr.msk.f32.vlgmr.msra.gmra.mrb[50].mxu1 %vm136_vm0, %v7511_v58 }
0x17a0   :  { %6427 = vmatprep.mubr.msk.f32.mxu1 %vm6869_vm1, %v6868_v53 }
0x185e   :  { %v3854_v20 = vpop.f32.mrb[36].mxu0 }
0x185f   :  { %v6371_v7 = vpop.f32.mrb[37].mxu0  ;;  %6379 = vmatprep.mubr.msk.f32.mxu0 %vm425_vm2, %v3854_v20 }
0x1862   :  { %v3927_v24 = vpop.f32.mrb[46].mxu1 }
0x1863   :  { %v6376_v29 = vpop.f32.mrb[47].mxu1  ;;  %6380 = vmatmul.mubr.msk.f32.vlgmr.msra.gmra.mrb[38].mxu0 %vm425_vm2, %v3927_v24 }
0x1864   :  { %6383 = vmatpush3.msra.mxu0 %v7261_v34  ;;  %6384 = vmatprep.mubr.msk.f32.mxu0 %vm425_vm2, %v7595_v42 }
0x1865   :  { %6686 = vmatprep.subr.bf16.mxu0 %v7271_v43 }
0x186a   :  { %v6397_v32 = vpop.f32.mrb[48].mxu1 }
0x186b   :  { %v4159_v33 = vpop.f32.mrb[49].mxu1  ;;  %6385 = vmatmul.mubr.msk.f32.vlgmr.msra.gmra.mrb[38].mxu0 %vm425_vm2, %v7593_v39  ;;  %v4165_v41 = vadd.f32 %v6397_v32, %v7306_v59 }
0x186c   :  { %6688 = vmatpush3.bf16.msra.mxu0 %v7271_v43  ;;  %6406 = vmatprep.mubr.msk.f32.mxu0 %vm136_vm0, %v7506_v57  ;;  %v4160_v47 = vadd.f32 %v7306_v59, %v4159_v33 }
0x186d   :  { %6690 = vmatprep.subr.bf16.mxu0 %v7284_v49 }
0x1870   :  { %6692 = vmatpush3.bf16.msra.mxu0 %v7284_v49 }
0x1871   :  { %6420 = vmatprep.subr.mxu0 %v6868_v53 }
0x1872   :  { %v6419_v34 = vpop.f32.mrb[50].mxu1 }
0x1873   :  { %6407 = vmatmul.mubr.msk.f32.vlgmr.msra.gmra.mrb[40].mxu0 %vm136_vm0, %v7511_v58  ;;  %v4309_v42 = vpop.f32.mrb[51].mxu1  ;;  %v4315_v49 = vadd.f32 %v6419_v34, %v7312_v4 }
0x1874   :  { %6422 = vmatprep.mubr.msk.f32.mxu0 %vm6869_vm1, %v6868_v53  ;;  %v4310_v45 = vadd.f32 %v7312_v4, %v4309_v42 }
0x1946   :  { %v6408_v39 = vpop.f32.mrb[40].mxu0 }
0x1947   :  { %v4240_v43 = vadd.f32 %v6408_v39, %v7301_v8  ;;  %v4234_v36 = vpop.f32.mrb[41].mxu0 }
0x1948   :  { %v4235_v40 = vadd.f32 %v7301_v8, %v4234_v36 }
0x1949   :  { %6426 = vmatpush3.xpose.msk.msra.mxu1 %vm425_vm2, %v4240_v43 }
0x194a   :  { %6421 = vmatpush3.xpose.msk.msra.mxu0 %vm425_vm2, %v4235_v40  ;;  %6435 = vmatprep.subr.mxu1 %v6868_v53 }
0x194b   :  { %6430 = vmatprep.subr.mxu0 %v6868_v53 }
0x194c   :  { %6428 = vmatmul.mubr.msk.f32.vlgmr.msra.gmra.mrb[52].mxu1 %vm425_vm2, %v4165_v41 }
0x194d   :  { %6423 = vmatmul.mubr.msk.f32.vlgmr.msra.gmra.mrb[42].mxu0 %vm425_vm2, %v4160_v47  ;;  %6436 = vmatpush3.msra.mxu1 %v4315_v49 }
0x194e   :  { %6431 = vmatpush3.msra.mxu0 %v4310_v45  ;;  %6437 = vmatprep.mubr.msk.f32.mxu1 %vm6869_vm1, %v6868_v53 }
0x194f   :  { %6702 = vmatprep.subr.bf16.mxu1 %v7341_v9  ;;  %6432 = vmatprep.mubr.msk.f32.mxu0 %vm6869_vm1, %v6868_v53 }
0x1950   :  { %6440 = vmatprep.subr.mxu0 %v7347_v11 }
0x1a1f   :  { %v4466_v8 = vpop.f32.mrb[52].mxu1 }
0x1a20   :  { %v4471_v59 = vmul.f32 0.35355338, %v4466_v8  ;;  %v4390_v4 = vpop.f32.mrb[42].mxu0  ;;  %v6429_v13 = vpop.f32.mrb[53].mxu1 }
0x1a21   :  { %v4470_v54 = vmul.f32 0.35355338, %v4390_v4  ;;  %v6424_v55 = vpop.f32.mrb[43].mxu0 }
0x1a22   :  { %v4475_v56 = vsel %vm425_vm2, %v4471_v59, -inf }
0x1a23   :  { %4476 = vmax.xlane.f32.xlu1 %v4475_v56  ;;  %v4472_v38 = vsel %vm425_vm2, %v4470_v54, -inf }
0x1a24   :  { %4473 = vmax.xlane.f32.xlu0 %v4472_v38 }
0x1ab0   :  { %v4477_v17 = vpop.xlane.xlu1 %4476 }
0x1ab1   :  { %v4479_v10 = vsub.f32 %v4471_v59, %v4477_v17  ;;  %v4474_v1 = vpop.xlane.xlu0 %4473 }
0x1ab2   :  { %v4478_v19 = vsub.f32 %v4470_v54, %v4474_v1 }
0x1ab3   :  { %v4482_v25 = vmul.f32 1.442695, %v4479_v10 }
0x1ab4   :  { %v4480_v16 = vmul.f32 1.442695, %v4478_v19 }
0x1ab5   :  { %6823 = vpow2.f32 %v4482_v25 }
0x1ab6   :  { %6825 = vpow2.f32 %v4480_v16 }
0x1abf   :  { %v6824_v12 = vpop.eup %6823 }
0x1ac0   :  { %v6826_v14 = vpop.eup %6825  ;;  %v4487_v60 = vsel %vm425_vm2, %v6824_v12, 0.0 }
0x1ac1   :  { %4488 = vadd.xlane.f32.xlu1 %v4487_v60  ;;  %v4484_v46 = vsel %vm425_vm2, %v6826_v14, 0.0 }
0x1ac2   :  { %4485 = vadd.xlane.f32.xlu0 %v4484_v46 }
0x1b4e   :  { %v4489_v18 = vpop.xlane.xlu1 %4488 }
0x1b4f   :  { %6827 = vrcp.f32 %v4489_v18  ;;  %v4486_v21 = vpop.xlane.xlu0 %4485 }
0x1b50   :  { %6829 = vrcp.f32 %v4486_v21 }
0x1b59   :  { %v6828_v50 = vpop.eup %6827 }
0x1b5a   :  { %v6830_v62 = vpop.eup %6829  ;;  %v4493_v2 = vmul.f32 %v6828_v50, %v6824_v12 }
0x1b5b   :  { %v4491_v63 = vmul.f32 %v6830_v62, %v6826_v14 }
0x1b5c   :  { %6438 = vmatmul.mubr.msk.f32.vlgmr.msra.gmra.mrb[54].mxu1 %vm425_vm2, %v4493_v2 }
0x1b5d   :  { %6704 = vmatpush3.bf16.msra.mxu1 %v7341_v9  ;;  %6433 = vmatmul.mubr.msk.f32.vlgmr.msra.gmra.mrb[44].mxu0 %vm425_vm2, %v4491_v63  ;;  %v5395_v63 = vld [vmem:[%s7828_s6] sm:$0xff] }
0x1b5e   :  { %6453 = vmatprep.mubr.msk.f32.mxu1 %vm136_vm0, %v7523_v0  ;;  %6706 = vmatprep.subr.bf16.mxu1 %v7356_v27 }
0x1b5f   :  { %6441 = vmatpush3.msra.mxu0 %v7347_v11 }
0x1b60   :  { %6710 = vmatprep.subr.bf16.mxu0 %v7401_v48 }
0x1b61   :  { %6708 = vmatpush3.bf16.msra.mxu1 %v7356_v27 }
0x1b62   :  { %6718 = vmatprep.subr.bf16.mxu1 %v7370_v37 }
0x1b64   :  { %6454 = vmatmul.mubr.msk.f32.vlgmr.msra.gmra.mrb[56].mxu1 %vm136_vm0, %v7525_v6 }
0x1b65   :  { %6720 = vmatpush3.bf16.msra.mxu1 %v7370_v37  ;;  %6475 = vmatprep.mubr.msk.f32.mxu1 %vm136_vm0, %v7506_v57 }
0x1b66   :  { %6722 = vmatprep.subr.bf16.mxu1 %v7381_v44 }
0x1b69   :  { %6724 = vmatpush3.bf16.msra.mxu1 %v7381_v44 }
0x1b6a   :  { %6488 = vmatprep.subr.mxu1 %v6868_v53 }
0x1b6c   :  { %6476 = vmatmul.mubr.msk.f32.vlgmr.msra.gmra.mrb[58].mxu1 %vm136_vm0, %v7511_v58 }
0x1b6d   :  { %6490 = vmatprep.mubr.msk.f32.mxu1 %vm6869_vm1, %v6868_v53 }
0x1c2f   :  { %v4636_v9 = vpop.f32.mrb[54].mxu1 }
0x1c30   :  { %v4563_v11 = vpop.f32.mrb[44].mxu0  ;;  %v6439_v27 = vpop.f32.mrb[55].mxu1 }
0x1c31   :  { %v6434_v0 = vpop.f32.mrb[45].mxu0  ;;  %6442 = vmatprep.mubr.msk.f32.mxu0 %vm425_vm2, %v4563_v11  ;;  %v5397_v27 = vld [vmem:[%s7828_s6 + $0x10] sm:$0xff] }
0x1c32   :  { %6443 = vmatmul.mubr.msk.f32.vlgmr.msra.gmra.mrb[38].mxu0 %vm425_vm2, %v4636_v9  ;;  %v5396_v9 = vld [vmem:[%s7828_s6 + $0x8] sm:$0xff]  ;;  %v5398_v0 = vld [vmem:[%s7828_s6 + $0x18] sm:$0xff] }
0x1c33   :  { %6712 = vmatpush3.bf16.msra.mxu0 %v7401_v48  ;;  %6464 = vmatprep.mubr.msk.f32.mxu0 %vm136_vm0, %v7506_v57  ;;  %v6725_v11 = vpack.c.bf16 %v5396_v9, %v5395_v63 }
0x1c34   :  { %6714 = vmatprep.subr.bf16.mxu0 %v7410_v61 }
0x1c37   :  { %v6455_v37 = vpop.f32.mrb[56].mxu1  ;;  %6716 = vmatpush3.bf16.msra.mxu0 %v7410_v61 }
0x1c38   :  { %v4789_v44 = vpop.f32.mrb[57].mxu1  ;;  %6478 = vmatprep.subr.mxu0 %v6868_v53 }
0x1c39   :  { %v4790_v57 = vadd.f32 %v7439_v30, %v4789_v44  ;;  %v5486_v44 = vld [vmem:[%s7829_s7] sm:$0xff] }
0x1c3a   :  { %6465 = vmatmul.mubr.msk.f32.vlgmr.msra.gmra.mrb[46].mxu0 %vm136_vm0, %v7511_v58  ;;  %v4795_v58 = vadd.f32 %v6455_v37, %v7439_v30  ;;  %v6729_v37 = vpack.c.bf16 %v5398_v0, %v5397_v27 }
0x1c3b   :  { %6480 = vmatprep.mubr.msk.f32.mxu0 %vm6869_vm1, %v6868_v53 }
0x1c3f   :  { %v6477_v49 = vpop.f32.mrb[58].mxu1 }
0x1c40   :  { %v4939_v41 = vpop.f32.mrb[59].mxu1  ;;  %v4945_v47 = vadd.f32 %v6477_v49, %v7427_v15 }
0x1c41   :  { %v4940_v45 = vadd.f32 %v7427_v15, %v4939_v41 }
0x1c43   :  { %6489 = vmatpush3.msra.mxu1 %v4940_v45 }
0x1c44   :  { %6726 = vmatprep.subr.bf16.mxu1 %v6725_v11 }
0x1d0d   :  { %v6466_v6 = vpop.f32.mrb[46].mxu0 }
0x1d0e   :  { %v4864_v51 = vpop.f32.mrb[47].mxu0  ;;  %v4870_v61 = vadd.f32 %v6466_v6, %v7434_v23  ;;  %v5487_v6 = vld [vmem:[%s7829_s7 + $0x8] sm:$0xff] }
0x1d0f   :  { %v4865_v48 = vadd.f32 %v7434_v23, %v4864_v51  ;;  %v5488_v51 = vld [vmem:[%s7829_s7 + $0x10] sm:$0xff] }
0x1d11   :  { %6479 = vmatpush3.xpose.msk.msra.mxu0 %vm425_vm2, %v4865_v48  ;;  %v6733_v48 = vpack.c.bf16 %v5487_v6, %v5486_v44 }
0x1d12   :  { %6483 = vmatprep.subr.mxu0 %v6868_v53 }
0x1d14   :  { %6481 = vmatmul.mubr.msk.f32.vlgmr.msra.gmra.mrb[48].mxu0 %vm425_vm2, %v4790_v57  ;;  %v5489_v57 = vld [vmem:[%s7829_s7 + $0x18] sm:$0xff] }
0x1d15   :  { %6484 = vmatpush3.xpose.msk.msra.mxu0 %vm425_vm2, %v4870_v61  ;;  %6485 = vmatprep.mubr.msk.f32.mxu0 %vm6869_vm1, %v6868_v53  ;;  %v6737_v61 = vpack.c.bf16 %v5489_v57, %v5488_v51 }
0x1d16   :  { %6493 = vmatprep.subr.mxu0 %v6868_v53 }
0x1d18   :  { %6486 = vmatmul.mubr.msk.f32.vlgmr.msra.gmra.mrb[50].mxu0 %vm425_vm2, %v4795_v58  ;;  %v5490_v58 = vld [vmem:[%s7829_s7 + $0x20] sm:$0xff] }
0x1d19   :  { %6495 = vmatprep.mubr.msk.f32.mxu0 %vm6869_vm1, %v6868_v53  ;;  %6494 = vmatpush3.msra.mxu0 %v4945_v47  ;;  %v5493_v47 = vld [vmem:[%s7829_s7 + $0x38] sm:$0xff] }
0x1d1a   :  { %6498 = vmatprep.subr.mxu0 %v7471_v3 }
0x1de7   :  { %v5020_v26 = vpop.f32.mrb[48].mxu0 }
0x1de8   :  { %v5100_v5 = vmul.f32 0.35355338, %v5020_v26  ;;  %v6482_v52 = vpop.f32.mrb[49].mxu0  ;;  %v5491_v26 = vld [vmem:[%s7829_s7 + $0x28] sm:$0xff] }
0x1dea   :  { %v5102_v23 = vsel %vm425_vm2, %v5100_v5, -inf }
0x1deb   :  { %5103 = vmax.xlane.f32.xlu0 %v5102_v23  ;;  %v5096_v20 = vpop.f32.mrb[50].mxu0 }
0x1dec   :  { %v5101_v7 = vmul.f32 0.35355338, %v5096_v20  ;;  %v6487_v24 = vpop.f32.mrb[51].mxu0 }
0x1dee   :  { %v5105_v29 = vsel %vm425_vm2, %v5101_v7, -inf }
0x1def   :  { %5106 = vmax.xlane.f32.xlu1 %v5105_v29 }
0x1e78   :  { %v5104_v30 = vpop.xlane.xlu0 %5103 }
0x1e79   :  { %v5108_v32 = vsub.f32 %v5100_v5, %v5104_v30  ;;  %v6741_v5 = vpack.c.bf16 %v5491_v26, %v5490_v58  ;;  %v5385_v30 = vsub.s32 4, %v6992_v35 }
0x1e7b   :  { %v5110_v33 = vmul.f32 1.442695, %v5108_v32  ;;  %v5391_v32 = vsub.s32 5, %v6992_v35  ;;  %v5492_v35 = vld [vmem:[%s7829_s7 + $0x30] sm:$0xff]  ;;  %s6871_s7 = smov [#allocation2]  }
0x1e7c   :  { %v5107_v34 = vpop.xlane.xlu1 %5106  ;;  %s5591_s14 = sshll.u32 %s6871_s7, 4  ;;  %s5592_s14 = int_to_ptr.vmem [resolvable:$true] %s5591_s14 }
0x1e7d   :  { %6831 = vpow2.f32 %v5110_v33  ;;  %v5109_v42 = vsub.f32 %v5101_v7, %v5107_v34  ;;  %v6843_v33 = vld [vmem:[%s7824_s2] sm:$0x3f]  ;;  %s6844_s15 = scalar_lea.vmem %s5592_s14, 256  ;;  %p6849_p1 = scmp.lt.s32.totalorder %s5592_s14, %s5592_s14 }
0x1e7e   :  { %v5386_v34 = vrot.slane %v6843_v33, %v5385_v30  ;;  %p6845_p0 = scmp.ne.s32.totalorder %s5592_s14, %s6844_s15  ;;  %p6850_p2 = scmp.lt.s32.totalorder %s6844_s15, %s6844_s15 }
0x1e7f   :  { %v5112_v39 = vmul.f32 1.442695, %v5109_v42 }
0x1e80   :  { %p6851_p3 = por %p6850_p2, %p6849_p1 }
0x1e81   :  { %6833 = vpow2.f32 %v5112_v39 }
0x1e82   :  { %p6852_p4 = pnand %p6851_p3, %p6845_p0 }
0x1e87   :  { %v6832_v53 = vpop.eup %6831 }
0x1e88   :  { %v5114_v43 = vsel %vm425_vm2, %v6832_v53, 0.0 }
0x1e89   :  { %5115 = vadd.xlane.f32.xlu0 %v5114_v43 }
0x1e8b   :  { %v6834_v36 = vpop.eup %6833 }
0x1e8c   :  { %v5117_v40 = vsel %vm425_vm2, %v6834_v36, 0.0 }
0x1e8d   :  { %5118 = vadd.xlane.f32.xlu1 %v5117_v40 }
0x1f16   :  { %v5116_v8 = vpop.xlane.xlu0 %5115 }
0x1f17   :  { %6835 = vrcp.f32 %v5116_v8  ;;  %v6745_v8 = vpack.c.bf16 %v5493_v47, %v5492_v35 }
0x1f1a   :  { %v5119_v59 = vpop.xlane.xlu1 %5118 }
0x1f1b   :  { %6837 = vrcp.f32 %v5119_v59  ;;  %v5785_v59 = vld [vmem:[%s7830_s8 + $0x1] ss:$0 sm:$0xff] }
0x1f21   :  { %v6836_v4 = vpop.eup %6835 }
0x1f22   :  { %v5121_v13 = vmul.f32 %v6836_v4, %v6832_v53 }
0x1f24   :  { %6491 = vmatmul.mubr.msk.f32.vlgmr.msra.gmra.mrb[60].mxu1 %vm425_vm2, %v5121_v13 }
0x1f25   :  { %v6838_v54 = vpop.eup %6837  ;;  %6728 = vmatpush3.bf16.msra.mxu1 %v6725_v11 }
0x1f26   :  { %v5123_v55 = vmul.f32 %v6838_v54, %v6834_v36  ;;  %6730 = vmatprep.subr.bf16.mxu1 %v6729_v37  ;;  %v5392_v36 = vrot.slane %v6843_v33, %v5391_v32 }
0x1f28   :  { %6496 = vmatmul.mubr.msk.f32.vlgmr.msra.gmra.mrb[52].mxu0 %vm425_vm2, %v5123_v55 }
0x1f29   :  { %6499 = vmatpush3.msra.mxu0 %v7471_v3  ;;  %6732 = vmatpush3.bf16.msra.mxu1 %v6729_v37 }
0x1f2a   :  { %6734 = vmatprep.subr.bf16.mxu0 %v6733_v48 }
0x1ff7   :  { %v5193_v56 = vpop.f32.mrb[60].mxu1 }
0x1ff8   :  { %v6492_v15 = vpop.f32.mrb[61].mxu1  ;;  %6500 = vmatprep.mubr.msk.f32.mxu0 %vm425_vm2, %v5193_v56 }
0x1ffb   :  { %v5266_v38 = vpop.f32.mrb[52].mxu0 }
0x1ffc   :  { %v6497_v17 = vpop.f32.mrb[53].mxu0  ;;  %6501 = vmatmul.mubr.msk.f32.vlgmr.msra.gmra.mrb[38].mxu0 %vm425_vm2, %v5266_v38  ;;  %v5790_v38 = vld [vmem:[%s7830_s8 + $0x2] ss:$0 sm:$0xff] }
0x1ffd   :  { %6736 = vmatpush3.bf16.msra.mxu0 %v6733_v48 }
0x1ffe   :  { %6738 = vmatprep.subr.bf16.mxu0 %v6737_v61 }
0x2001   :  { %6740 = vmatpush3.bf16.msra.mxu0 %v6737_v61 }
0x2002   :  { %6742 = vmatprep.subr.bf16.mxu0 %v6741_v5 }
0x2005   :  { %6744 = vmatpush3.bf16.msra.mxu0 %v6741_v5 }
0x2006   :  { %6746 = vmatprep.subr.bf16.mxu0 %v6745_v8 }
0x2009   :  { %6748 = vmatpush3.bf16.msra.mxu0 %v6745_v8 }
0x20cf   :  { %v6502_v10 = vpop.f32.mrb[38].mxu0 }
0x20d0   :  { %v5354_v1 = vadd.f32 %v6502_v10, %v7485_v22  ;;  %v5342_v19 = vpop.f32.mrb[39].mxu0 }
0x20d1   :  { %v5353_v25 = vadd.f32 %v7485_v22, %v5342_v19 }
0x20d2   :  { %v7744_v16 = vadd.f32 %v5354_v1, %v7490_v31 }
0x20d3   :  { %v7747_v12 = vadd.f32 %v5353_v25, %v7493_v28 }
0x20d4   :  { %v5360_v3 = vsel %vm136_vm0, %v7744_v16, 0.0 }
0x20d5   :  { %5361 = vadd.xlane.f32.xlu1 %v5360_v3  ;;  %v5357_v14 = vsel %vm136_vm0, %v7747_v12, 0.0 }
0x20d6   :  { %5358 = vadd.xlane.f32.xlu0 %v5357_v14 }
0x2162   :  { %v5362_v60 = vpop.xlane.xlu1 %5361 }
0x2163   :  { %v5364_v46 = vmul.f32 0.03125, %v5362_v60  ;;  %v5359_v18 = vpop.xlane.xlu0 %5358 }
0x2164   :  { %v5363_v21 = vmul.f32 0.03125, %v5359_v18 }
0x2165   :  { %v5366_v22 = vsub.f32 %v7744_v16, %v5364_v46 }
0x2166   :  { %v5365_v31 = vsub.f32 %v7747_v12, %v5363_v21 }
0x2167   :  { %v5368_v50 = vmul.f32 %v5366_v22, %v5366_v22 }
0x2168   :  { %v5367_v62 = vmul.f32 %v5365_v31, %v5365_v31 }
0x2169   :  { %v5372_v28 = vsel %vm136_vm0, %v5368_v50, 0.0 }
0x216a   :  { %5373 = vadd.xlane.f32.xlu1 %v5372_v28  ;;  %v5369_v2 = vsel %vm136_vm0, %v5367_v62, 0.0 }
0x216b   :  { %5370 = vadd.xlane.f32.xlu0 %v5369_v2 }
0x21f7   :  { %v5374_v52 = vpop.xlane.xlu1 %5373 }
0x21f8   :  { %v5376_v23 = vmul.f32 0.03125, %v5374_v52  ;;  %v5371_v20 = vpop.xlane.xlu0 %5370 }
0x21f9   :  { %v5375_v7 = vmul.f32 0.03125, %v5371_v20 }
0x21fa   :  { %v5378_v24 = vadd.f32 1e-05, %v5376_v23 }
0x21fb   :  { %v5377_v29 = vadd.f32 1e-05, %v5375_v7 }
0x21fc   :  { %6839 = vrsqrt.f32 %v5378_v24 }
0x21fd   :  { %6841 = vrsqrt.f32 %v5377_v29 }
0x2206   :  { %v6840_v42 = vpop.eup %6839 }
0x2207   :  { %v6842_v39 = vpop.eup %6841  ;;  %v5382_v53 = vmul.f32 %v6840_v42, %v5366_v22 }
0x2208   :  { %v5381_v43 = vmul.f32 %v6842_v39, %v5365_v31 }
0x2209   :  { %v5388_v40 = vmul.f32 %v5386_v34, %v5382_v53 }
0x220a   :  { %v5387_v49 = vmul.f32 %v5386_v34, %v5381_v43 }
0x220b   :  { %v5394_v45 = vadd.f32 %v5392_v36, %v5388_v40 }
0x220c   :  { %v5393_v41 = vadd.f32 %v5392_v36, %v5387_v49 }
0x220e   :  { %6511 = vmatprep.mubr.msk.f32.mxu1 %vm136_vm0, %v5393_v41 }
0x220f   :  { %6512 = vmatmul.mubr.msk.f32.vlgmr.msra.gmra.mrb[62].mxu1 %vm136_vm0, %v5394_v45 }
0x22e2   :  { %v6513_v4 = vpop.f32.mrb[62].mxu1 }
0x22e3   :  { %v5481_v13 = vadd.f32 %v6513_v4, %v5785_v59  ;;  %v5475_v54 = vpop.f32.mrb[63].mxu1 }
0x22e4   :  { %v5476_v55 = vadd.f32 %v5785_v59, %v5475_v54 }
0x22e5   :  { %v5485_v15 = vmax.f32 %v5481_v13, 0.0 }
0x22e6   :  { %v5484_v56 = vmax.f32 %v5476_v55, 0.0 }
0x22e8   :  { %6530 = vmatprep.mubr.msk.f32.mxu0 %vm5494_vm4, %v5484_v56 }
0x22e9   :  { %6531 = vmatmul.mubr.msk.f32.vlgmr.msra.gmra.mrb[54].mxu0 %vm5494_vm4, %v5485_v15 }
0x23bc   :  { %v6532_v17 = vpop.f32.mrb[54].mxu0 }
0x23bd   :  { %v5577_v10 = vadd.f32 %v6532_v17, %v7744_v16  ;;  %v5567_v1 = vpop.f32.mrb[55].mxu0 }
0x23be   :  { %v5576_v19 = vadd.f32 %v5567_v1, %v7747_v12 }
0x23bf   :  { %v5583_v25 = vadd.f32 %v5790_v38, %v5577_v10 }
0x23c0   :  { %v5582_v3 = vadd.f32 %v5790_v38, %v5576_v19 }
0x23c1   :  { %5585 = vst.msk [vmem:[#allocation2 + $0x8] sm:$0xff] %vm136_vm0, %v5583_v25 }
0x23c2   :  { %5584 = vst.msk [vmem:[#allocation2] sm:$0xff] %vm136_vm0, %v5582_v3 }
0x23c3   :  { %6855 = shalt.err (!%p6852_p4)
}
0x23c4   :  { %s6856_s17 = scalar_lea.hbm %s7831_s9, 256 }
0x23c5   :  { %p6857_p5 = scmp.ne.s32.totalorder %s7831_s9, %s6856_s17  ;;  %p6860_p6 = scmp.lt.u32.totalorder %s6856_s17, %s7831_s9 }
0x23c7   :  { %p6862_p7 = pnand %p6860_p6, %p6857_p5 }
0x23c9   :  { %6865 = shalt.err (!%p6862_p7)
}
0x23ca   :  { %s6872_s22 = smov 128   ;;  %s6873_s23 = smov 8  }
0x23cb   :  { %5597 = dma.vmem_to_hbm [thread:$0]  %s5592_s14, 256, %s7831_s9, [#allocation3], %s6872_s22, %s6872_s22, %s6873_s23  }
0x23cc   :  { %6866 = dma.done.wait [#allocation3], 256  }
0x23cd   :  { %6867 = vsyncadd [#allocation3], 4294967040 }
0x23ce   :  { %5601 = vsyncpa [#allocation3], 1 }

</bundles_post_ra>
